<compile_context>
chip_gen: v6e
topology: v6e:2x2x1
jax: 0.10.0
libtpu: 0.0.40
codegen_flags: <defaults>
</compile_context>

<pallas_src>
import jax
import jax.numpy as jnp
import numpy as np
from jax.experimental import pallas as pl
from jax.experimental.pallas import tpu as pltpu

L_IN = 44           # input sequence length (so that 32 * (44 // 2) = 704)
C1 = 16
C2 = 32
L_POOL = L_IN // 2  # 22
HID = 64
NCLS = 3
EPS = 1e-5


def multiclass_kernel(se_ref, w1s_ref, t1f_ref,
                      w2s_ref, t2f_ref,
                      w3f_ref, b3_ref, w4_ref, b4_ref, out_ref):
    # ---- layer1: Conv1d(1->16,k=3,p=1) + BN(eval) + ReLU + MaxPool(2) ----
    # Flat lane layout (B, 22*16), lane index = j*16 + c (j = pooled timestep).
    # w1s already includes the folded BN scale; t1f = folded bias + BN shift.
    se = se_ref[...]                       # (4, B, 352) shifted even/odd input views
    w1 = w1s_ref[...]                      # (3, 1, 352) BN-scaled conv1 taps
    t1 = t1f_ref[...]                      # (1, 352)    folded conv bias + BN shift
    even = se[0] * w1[0] + se[1] * w1[1] + se[2] * w1[2] + t1   # BN(conv1) at t = 2j
    odd = se[1] * w1[0] + se[2] * w1[1] + se[3] * w1[2] + t1    # BN(conv1) at t = 2j+1
    # relu and maxpool commute (relu monotone): max(relu(a), relu(b)) = relu(max(a,b))
    pooled = jnp.maximum(jnp.maximum(even, odd), 0.0)           # (B, 352)

    # ---- layer2: Conv1d(16->32,k=3,p=1) + BN(eval) + ReLU ----
    # Single banded (352, 704) matmul with BN scale pre-folded into columns;
    # output is already in flat (t*32 + co) order, conv zero-padding is
    # encoded as zero blocks in the weight.
    z = jnp.dot(pooled, w2s_ref[...], preferred_element_type=jnp.float32)  # (B, 704)
    a2 = jnp.maximum(z + t2f_ref[...], 0.0)                                # (B, 704)

    # ---- layer3: Linear(704->64) + Dropout + ReLU + Linear(64->3) ----
    # TODO(synk): Dropout(0.5) is eval-mode identity (no train-time RNG mask).
    h = jnp.dot(a2, w3f_ref[...], preferred_element_type=jnp.float32) + b3_ref[...]
    h = jnp.maximum(h, 0.0)                                                # (B, 64)
    out_ref[...] = (jnp.dot(h, w4_ref[...], preferred_element_type=jnp.float32)
                    + b4_ref[...])                                         # (B, 3)


def init_params(key):
    ks = jax.random.split(key, 12)
    p = {}
    p['w1'] = 0.4 * jax.random.normal(ks[0], (C1, 1, 3), jnp.float32)
    p['b1'] = 0.1 * jax.random.normal(ks[1], (C1,), jnp.float32)
    p['g1'] = 1.0 + 0.1 * jax.random.normal(ks[2], (C1,), jnp.float32)
    p['be1'] = 0.1 * jax.random.normal(ks[3], (C1,), jnp.float32)
    p['m1'] = jnp.zeros((C1,), jnp.float32)   # fresh BatchNorm running stats
    p['v1'] = jnp.ones((C1,), jnp.float32)
    p['w2'] = 0.2 * jax.random.normal(ks[4], (C2, C1, 3), jnp.float32)
    p['b2'] = 0.1 * jax.random.normal(ks[5], (C2,), jnp.float32)
    p['g2'] = 1.0 + 0.1 * jax.random.normal(ks[6], (C2,), jnp.float32)
    p['be2'] = 0.1 * jax.random.normal(ks[7], (C2,), jnp.float32)
    p['m2'] = jnp.zeros((C2,), jnp.float32)
    p['v2'] = jnp.ones((C2,), jnp.float32)
    p['w3'] = 0.05 * jax.random.normal(ks[8], (HID, C2 * L_POOL), jnp.float32)
    p['b3'] = 0.1 * jax.random.normal(ks[9], (HID,), jnp.float32)
    p['w4'] = 0.2 * jax.random.normal(ks[10], (NCLS, HID), jnp.float32)
    p['b4'] = 0.1 * jax.random.normal(ks[11], (NCLS,), jnp.float32)
    return p


def to_kernel_params(p):
    # Fold BatchNorm (eval) affine + conv bias into per-channel scale/shift,
    # then fold the scale directly into the conv weights.
    s1 = p['g1'] / jnp.sqrt(p['v1'] + EPS)                 # (16,)
    t1 = s1 * (p['b1'] - p['m1']) + p['be1']               # (16,)
    s2 = p['g2'] / jnp.sqrt(p['v2'] + EPS)                 # (32,)
    t2 = s2 * (p['b2'] - p['m2']) + p['be2']               # (32,)

    # layer1 params tiled to the flat (j*16 + c) lane layout; BN scale folded
    # into the taps so the kernel skips the extra per-lane multiply.
    w1s = jnp.stack([jnp.tile(p['w1'][:, 0, k] * s1, L_POOL)
                     for k in range(3)])[:, None, :]       # (3, 1, 352)
    t1f = jnp.tile(t1, L_POOL)[None, :]                    # (1, 352)

    # Banded im2col conv2 weight: W2BIG[j*16+ci, t*32+co] = w2[co, ci, j-t+1]
    # inside the kernel-size band, zero elsewhere (also encodes the zero
    # padding at t=0 / t=21).  pooled_flat @ W2BIG == conv2 output, already in
    # the flat (t*32 + co) order the first Linear consumes.  BN scale s2 is
    # folded into the columns.
    w2t = jnp.transpose(p['w2'], (2, 1, 0))                # (3, 16, 32): [k, ci, co]
    band = jnp.stack([jnp.eye(L_POOL, L_POOL, k=1 - kk, dtype=jnp.float32)
                      for kk in range(3)])                 # (3, 22, 22): [k, j, t]
    w2big = jnp.einsum('kjt,kio->jito', band, w2t).reshape(L_POOL * C1,
                                                           L_POOL * C2)  # (352, 704)
    w2s = w2big * jnp.tile(s2, L_POOL)[None, :]            # (352, 704) BN-scaled
    t2f = jnp.tile(t2, L_POOL)[None, :]                    # (1, 704)

    # PyTorch .view() flatten order of (B, 32, 22) is index co*22 + t; permute
    # the FC weight to the kernel's flat order t*32 + co.
    w3f = jnp.transpose(p['w3'].reshape(HID, C2, L_POOL),
                        (2, 1, 0)).reshape(C2 * L_POOL, HID)   # (704, 64)
    w4k = jnp.transpose(p['w4'], (1, 0))                   # (64, 3)
    return (w1s, t1f, w2s, t2f, w3f,
            p['b3'][None, :], w4k, p['b4'][None, :])


def multiclass_forward(x_ncl, p):
    B = x_ncl.shape[0]
    # Zero-pad the sequence host-side (free XLA layout plumbing, no in-kernel
    # masked single-lane stores).
    x_pad = jnp.pad(x_ncl[:, 0, :].astype(jnp.float32), ((0, 0), (1, 1)))  # (B, 46)
    # SE[m, b, j*16+c] = x_pad[b, 2j + m]: the four shifted even/odd conv-tap
    # views, lane-expanded over the 16 conv1 output channels.
    se = jnp.stack([jnp.repeat(x_pad[:, m:m + 2 * L_POOL:2], C1, axis=1)
                    for m in range(4)], axis=0)                            # (4, B, 352)
    kparams = to_kernel_params(p)
    vmem = pl.BlockSpec(memory_space=pltpu.MemorySpace.VMEM)
    return pl.pallas_call(
        multiclass_kernel,
        out_shape=jax.ShapeDtypeStruct((B, NCLS), jnp.float32),
        in_specs=[vmem] * (1 + len(kparams)),
        out_specs=vmem,
        compiler_params=pltpu.CompilerParams(vmem_limit_bytes=32 * 1024 * 1024),
    )(se, *kparams)


def ref_forward(x, p):
    # Pure-JAX reference in PyTorch NCL layout / flatten order (eval mode).
    B = x.shape[0]
    xp = jnp.pad(x, ((0, 0), (0, 0), (1, 1)))
    y1 = jnp.zeros((B, C1, L_IN), jnp.float32) + p['b1'][None, :, None]
    for k in range(3):
        y1 = y1 + p['w1'][:, 0, k][None, :, None] * xp[:, :, k:k + L_IN]
    y1 = ((y1 - p['m1'][None, :, None]) / jnp.sqrt(p['v1'] + EPS)[None, :, None]
          * p['g1'][None, :, None] + p['be1'][None, :, None])
    y1 = jnp.maximum(y1, 0.0)
    pooled = jnp.max(y1.reshape(B, C1, L_POOL, 2), axis=-1)
    xp2 = jnp.pad(pooled, ((0, 0), (0, 0), (1, 1)))
    y2 = jnp.zeros((B, C2, L_POOL), jnp.float32) + p['b2'][None, :, None]
    for k in range(3):
        y2 = y2 + jnp.einsum('oi,bit->bot', p['w2'][:, :, k], xp2[:, :, k:k + L_POOL])
    y2 = ((y2 - p['m2'][None, :, None]) / jnp.sqrt(p['v2'] + EPS)[None, :, None]
          * p['g2'][None, :, None] + p['be2'][None, :, None])
    y2 = jnp.maximum(y2, 0.0)
    flat = y2.reshape(B, C2 * L_POOL)            # PyTorch .view(B, -1): c*22 + t
    h = jnp.maximum(flat @ p['w3'].T + p['b3'], 0.0)
    return h @ p['w4'].T + p['b4']


if __name__ == "__main__":
    key = jax.random.PRNGKey(0)
    kx, kp = jax.random.split(key)
    x = jax.random.normal(kx, (2, 1, L_IN), jnp.float32)   # (B, C_in, L) like PyTorch
    params = init_params(kp)

    out = jax.jit(multiclass_forward)(x, params)
    out = jax.block_until_ready(out)

    expected = ref_forward(x, params)
    np.testing.assert_allclose(np.asarray(out), np.asarray(expected),
                               rtol=1e-4, atol=1e-4)
    assert out.shape == (2, NCLS)
    print("KERNEL_OK")
</pallas_src>

<mosaic_0001>
module attributes {stable_mosaic.version = 11 : i64} {
  func.func @multiclass_kernel(%arg0: memref<4x2x352xf32, #tpu.memory_space<vmem>>, %arg1: memref<3x1x352xf32, #tpu.memory_space<vmem>>, %arg2: memref<1x352xf32, #tpu.memory_space<vmem>>, %arg3: memref<352x704xf32, #tpu.memory_space<vmem>>, %arg4: memref<1x704xf32, #tpu.memory_space<vmem>>, %arg5: memref<704x64xf32, #tpu.memory_space<vmem>>, %arg6: memref<1x64xf32, #tpu.memory_space<vmem>>, %arg7: memref<64x3xf32, #tpu.memory_space<vmem>>, %arg8: memref<1x3xf32, #tpu.memory_space<vmem>>, %arg9: memref<2x3xf32, #tpu.memory_space<vmem>>) attributes {dimension_semantics = [], scalar_prefetch = 0 : i64, scratch_operands = 0 : i64, tpu.core_type = #tpu.core_type<tc>} {
    %c0 = arith.constant 0 : index
    %c0_0 = arith.constant 0 : index
    %c0_1 = arith.constant 0 : index
    %0 = vector.load %arg0[%c0, %c0_0, %c0_1] : memref<4x2x352xf32, #tpu.memory_space<vmem>>, vector<4x2x352xf32>
    %c0_2 = arith.constant 0 : index
    %c0_3 = arith.constant 0 : index
    %c0_4 = arith.constant 0 : index
    %1 = vector.load %arg1[%c0_2, %c0_3, %c0_4] : memref<3x1x352xf32, #tpu.memory_space<vmem>>, vector<3x1x352xf32>
    %c0_5 = arith.constant 0 : index
    %c0_6 = arith.constant 0 : index
    %2 = vector.load %arg2[%c0_5, %c0_6] : memref<1x352xf32, #tpu.memory_space<vmem>>, vector<1x352xf32>
    %3 = vector.extract_strided_slice %0 {offsets = [0, 0, 0], sizes = [1, 2, 352], strides = [1, 1, 1]} : vector<4x2x352xf32> to vector<1x2x352xf32>
    %4 = vector.shape_cast %3 : vector<1x2x352xf32> to vector<2x352xf32>
    %5 = vector.extract_strided_slice %1 {offsets = [0, 0, 0], sizes = [1, 1, 352], strides = [1, 1, 1]} : vector<3x1x352xf32> to vector<1x1x352xf32>
    %6 = vector.shape_cast %5 : vector<1x1x352xf32> to vector<1x352xf32>
    %7 = vector.broadcast %6 : vector<1x352xf32> to vector<2x352xf32>
    %8 = arith.mulf %4, %7 : vector<2x352xf32>
    %9 = vector.extract_strided_slice %0 {offsets = [1, 0, 0], sizes = [1, 2, 352], strides = [1, 1, 1]} : vector<4x2x352xf32> to vector<1x2x352xf32>
    %10 = vector.shape_cast %9 : vector<1x2x352xf32> to vector<2x352xf32>
    %11 = vector.extract_strided_slice %1 {offsets = [1, 0, 0], sizes = [1, 1, 352], strides = [1, 1, 1]} : vector<3x1x352xf32> to vector<1x1x352xf32>
    %12 = vector.shape_cast %11 : vector<1x1x352xf32> to vector<1x352xf32>
    %13 = vector.broadcast %12 : vector<1x352xf32> to vector<2x352xf32>
    %14 = arith.mulf %10, %13 : vector<2x352xf32>
    %15 = arith.addf %8, %14 : vector<2x352xf32>
    %16 = vector.extract_strided_slice %0 {offsets = [2, 0, 0], sizes = [1, 2, 352], strides = [1, 1, 1]} : vector<4x2x352xf32> to vector<1x2x352xf32>
    %17 = vector.shape_cast %16 : vector<1x2x352xf32> to vector<2x352xf32>
    %18 = vector.extract_strided_slice %1 {offsets = [2, 0, 0], sizes = [1, 1, 352], strides = [1, 1, 1]} : vector<3x1x352xf32> to vector<1x1x352xf32>
    %19 = vector.shape_cast %18 : vector<1x1x352xf32> to vector<1x352xf32>
    %20 = vector.broadcast %19 : vector<1x352xf32> to vector<2x352xf32>
    %21 = arith.mulf %17, %20 : vector<2x352xf32>
    %22 = arith.addf %15, %21 : vector<2x352xf32>
    %23 = vector.broadcast %2 : vector<1x352xf32> to vector<2x352xf32>
    %24 = arith.addf %22, %23 : vector<2x352xf32>
    %25 = vector.extract_strided_slice %0 {offsets = [1, 0, 0], sizes = [1, 2, 352], strides = [1, 1, 1]} : vector<4x2x352xf32> to vector<1x2x352xf32>
    %26 = vector.shape_cast %25 : vector<1x2x352xf32> to vector<2x352xf32>
    %27 = vector.extract_strided_slice %1 {offsets = [0, 0, 0], sizes = [1, 1, 352], strides = [1, 1, 1]} : vector<3x1x352xf32> to vector<1x1x352xf32>
    %28 = vector.shape_cast %27 : vector<1x1x352xf32> to vector<1x352xf32>
    %29 = vector.broadcast %28 : vector<1x352xf32> to vector<2x352xf32>
    %30 = arith.mulf %26, %29 : vector<2x352xf32>
    %31 = vector.extract_strided_slice %0 {offsets = [2, 0, 0], sizes = [1, 2, 352], strides = [1, 1, 1]} : vector<4x2x352xf32> to vector<1x2x352xf32>
    %32 = vector.shape_cast %31 : vector<1x2x352xf32> to vector<2x352xf32>
    %33 = vector.extract_strided_slice %1 {offsets = [1, 0, 0], sizes = [1, 1, 352], strides = [1, 1, 1]} : vector<3x1x352xf32> to vector<1x1x352xf32>
    %34 = vector.shape_cast %33 : vector<1x1x352xf32> to vector<1x352xf32>
    %35 = vector.broadcast %34 : vector<1x352xf32> to vector<2x352xf32>
    %36 = arith.mulf %32, %35 : vector<2x352xf32>
    %37 = arith.addf %30, %36 : vector<2x352xf32>
    %38 = vector.extract_strided_slice %0 {offsets = [3, 0, 0], sizes = [1, 2, 352], strides = [1, 1, 1]} : vector<4x2x352xf32> to vector<1x2x352xf32>
    %39 = vector.shape_cast %38 : vector<1x2x352xf32> to vector<2x352xf32>
    %40 = vector.extract_strided_slice %1 {offsets = [2, 0, 0], sizes = [1, 1, 352], strides = [1, 1, 1]} : vector<3x1x352xf32> to vector<1x1x352xf32>
    %41 = vector.shape_cast %40 : vector<1x1x352xf32> to vector<1x352xf32>
    %42 = vector.broadcast %41 : vector<1x352xf32> to vector<2x352xf32>
    %43 = arith.mulf %39, %42 : vector<2x352xf32>
    %44 = arith.addf %37, %43 : vector<2x352xf32>
    %45 = vector.broadcast %2 : vector<1x352xf32> to vector<2x352xf32>
    %46 = arith.addf %44, %45 : vector<2x352xf32>
    %47 = arith.maximumf %24, %46 : vector<2x352xf32>
    %cst = arith.constant 0.000000e+00 : f32
    %48 = vector.broadcast %cst : f32 to vector<2x352xf32>
    %49 = arith.maximumf %47, %48 : vector<2x352xf32>
    %c0_7 = arith.constant 0 : index
    %c0_8 = arith.constant 0 : index
    %50 = vector.load %arg3[%c0_7, %c0_8] : memref<352x704xf32, #tpu.memory_space<vmem>>, vector<352x704xf32>
    %cst_9 = arith.constant dense<0.000000e+00> : vector<2x704xf32>
    %51 = tpu.matmul %49, %50, %cst_9 {dimension_numbers = #tpu.dot_dimension_numbers<[1], [0], [0], [1], [0, 0, 1, 1], [], []>} : vector<2x352xf32>, vector<352x704xf32>, vector<2x704xf32> -> vector<2x704xf32>
    %c0_10 = arith.constant 0 : index
    %c0_11 = arith.constant 0 : index
    %52 = vector.load %arg4[%c0_10, %c0_11] : memref<1x704xf32, #tpu.memory_space<vmem>>, vector<1x704xf32>
    %53 = vector.broadcast %52 : vector<1x704xf32> to vector<2x704xf32>
    %54 = arith.addf %51, %53 : vector<2x704xf32>
    %cst_12 = arith.constant 0.000000e+00 : f32
    %55 = vector.broadcast %cst_12 : f32 to vector<2x704xf32>
    %56 = arith.maximumf %54, %55 : vector<2x704xf32>
    %c0_13 = arith.constant 0 : index
    %c0_14 = arith.constant 0 : index
    %57 = vector.load %arg5[%c0_13, %c0_14] : memref<704x64xf32, #tpu.memory_space<vmem>>, vector<704x64xf32>
    %cst_15 = arith.constant dense<0.000000e+00> : vector<2x64xf32>
    %58 = tpu.matmul %56, %57, %cst_15 {dimension_numbers = #tpu.dot_dimension_numbers<[1], [0], [0], [1], [0, 0, 1, 1], [], []>} : vector<2x704xf32>, vector<704x64xf32>, vector<2x64xf32> -> vector<2x64xf32>
    %c0_16 = arith.constant 0 : index
    %c0_17 = arith.constant 0 : index
    %59 = vector.load %arg6[%c0_16, %c0_17] : memref<1x64xf32, #tpu.memory_space<vmem>>, vector<1x64xf32>
    %60 = vector.broadcast %59 : vector<1x64xf32> to vector<2x64xf32>
    %61 = arith.addf %58, %60 : vector<2x64xf32>
    %cst_18 = arith.constant 0.000000e+00 : f32
    %62 = vector.broadcast %cst_18 : f32 to vector<2x64xf32>
    %63 = arith.maximumf %61, %62 : vector<2x64xf32>
    %c0_19 = arith.constant 0 : index
    %c0_20 = arith.constant 0 : index
    %64 = vector.load %arg7[%c0_19, %c0_20] : memref<64x3xf32, #tpu.memory_space<vmem>>, vector<64x3xf32>
    %cst_21 = arith.constant dense<0.000000e+00> : vector<2x3xf32>
    %65 = tpu.matmul %63, %64, %cst_21 {dimension_numbers = #tpu.dot_dimension_numbers<[1], [0], [0], [1], [0, 0, 1, 1], [], []>} : vector<2x64xf32>, vector<64x3xf32>, vector<2x3xf32> -> vector<2x3xf32>
    %c0_22 = arith.constant 0 : index
    %c0_23 = arith.constant 0 : index
    %66 = vector.load %arg8[%c0_22, %c0_23] : memref<1x3xf32, #tpu.memory_space<vmem>>, vector<1x3xf32>
    %67 = vector.broadcast %66 : vector<1x3xf32> to vector<2x3xf32>
    %68 = arith.addf %65, %67 : vector<2x3xf32>
    %c0_24 = arith.constant 0 : index
    %c0_25 = arith.constant 0 : index
    %69 = vector.load %arg9[%c0_24, %c0_25] : memref<2x3xf32, #tpu.memory_space<vmem>>, vector<2x3xf32>
    tpu.vector_store %arg9[%c0_24, %c0_25], %68 {strides = array<i32>} : memref<2x3xf32, #tpu.memory_space<vmem>>, vector<2x3xf32>,
    return
  }
}

</mosaic_0001>

<bundles_post_ra>
// kernel: tile.33
= control target key start
LH: loop header
LB: loop body
LE: loop exit
PB: predicated region body
PF: predicated region fallthrough
CT: control target
= control target key end

     0   :  { %s34_s0 = inlined_call_operand.vmem [shape: f32[16], index: 0, kind: input, shape index: {}]   ;;  %s35_s1 = inlined_call_operand.vmem [shape: f32[22,16], index: 1, kind: output, shape index: {}]  }
   0x1   :  { %v4_v0 = vld [vmem:[%s34_s0] ss:$0 sm:$0xff] }
   0x2   :  { %5 = vst [vmem:[%s35_s1] sm:$0xff] %v4_v0  ;;  %10 = vst [vmem:[%s35_s1 + $0x8] sm:$0xff] %v4_v0 }
   0x3   :  { %11 = vst [vmem:[%s35_s1 + $0x10] sm:$0xff] %v4_v0 }

// kernel: tile.42
= control target key start
LH: loop header
LB: loop body
LE: loop exit
PB: predicated region body
PF: predicated region fallthrough
CT: control target
= control target key end

     0   :  { %s6_s6 = smov 3  ;;  %s13_s11 = smov 3  ;;  %vm3_vm0 = vcmask 130048   ;;  %vm10_vm1 = vcmask 1048448   ;;  %vm17_vm2 = vcmask 917248   ;;  %vm23_vm3 = vcmask 786048   ;;  %s137_s0 = inlined_call_operand.vmem [shape: f32[22,16], index: 0, kind: input, shape index: {}]   ;;  %s138_s1 = inlined_call_operand.vmem [shape: f32[1,352], index: 1, kind: output, shape index: {}]  }
   0x1   :  { %v73_v0 = vld [vmem:[%s137_s0 + $0x5] ss:$8 sm:$0x7]   ;;  %v71_v1 = vld [vmem:[%s137_s0 + $0x7] ss:$8 sm:%s6_s6]   ;;  %s87_s12 = smov 112  }
   0x2   :  { %8 = vrot.lane.b32.xlu0 %v71_v1, %s87_s12  ;;  %s88_s13 = smov 80   ;;  %v72_v2 = vld [vmem:[%s137_s0 + $0x6] ss:$8 sm:%s13_s11]   ;;  %v74_v3 = vld [vmem:[%s137_s0 + $0x4] ss:$8 sm:$0x7]  }
   0x3   :  { %21 = vrot.lane.b32.xlu1 %v73_v0, %s88_s13  ;;  %s89_s18 = smov 96   ;;  %s90_s19 = smov 64   ;;  %v75_v4 = vld [vmem:[%s137_s0 + $0x3] ss:$8 sm:$0x7]   ;;  %vm29_vm4 = vcmask 654848  }
   0x4   :  { %v2_v5 = vld [vmem:[%s137_s0] ss:$8 sm:$0x7]   ;;  %v76_v6 = vld [vmem:[%s137_s0 + $0x2] ss:$8 sm:$0x7]  }
   0x5   :  { %4 = vst.msk [vmem:[#allocation0] ss:$8 sm:$0x7] %vm3_vm0, %v2_v5   ;;  %s91_s26 = smov 48   ;;  %s92_s27 = smov 32   ;;  %vm35_vm5 = vcmask 523648  }
   0x6   :  { %15 = vrot.lane.b32.xlu0 %v72_v2, %s89_s18  ;;  %v77_v7 = vld [vmem:[%s137_s0 + $0x1] ss:$8 sm:$0x7]   ;;  %s93_s0 = smov 16   ;;  %vm41_vm6 = vcmask 392448   ;;  %vm47_vm7 = vcmask 261248  }
   0x7   :  { %27 = vrot.lane.b32.xlu1 %v74_v3, %s90_s19 }
   0xa   :  { %33 = vrot.lane.b32.xlu0 %v75_v4, %s91_s26 }
   0xb   :  { %39 = vrot.lane.b32.xlu1 %v76_v6, %s92_s27 }
   0xe   :  { %45 = vrot.lane.b32.xlu0 %v77_v7, %s93_s0 }
  0x74   :  { %v9_v8 = vpop.permute.xlu0 %8  }
  0x75   :  { %v22_v9 = vpop.permute.xlu1 %21   ;;  %11 = vst.msk [vmem:[#allocation0] ss:$8 sm:$0x3] %vm10_vm1, %v9_v8  }
  0x78   :  { %v16_v10 = vpop.permute.xlu0 %15  }
  0x79   :  { %v28_v11 = vpop.permute.xlu1 %27   ;;  %18 = vst.msk [vmem:[#allocation0] ss:$8 sm:$0x3] %vm17_vm2, %v16_v10  }
  0x7a   :  { %24 = vst.msk [vmem:[#allocation0] ss:$8 sm:$0x7] %vm23_vm3, %v22_v9  }
  0x7b   :  { %30 = vst.msk [vmem:[#allocation0] ss:$8 sm:$0x7] %vm29_vm4, %v28_v11  }
  0x7c   :  { %v34_v12 = vpop.permute.xlu0 %33  }
  0x7d   :  { %v40_v13 = vpop.permute.xlu1 %39   ;;  %36 = vst.msk [vmem:[#allocation0] ss:$8 sm:$0x7] %vm35_vm5, %v34_v12  }
  0x7e   :  { %42 = vst.msk [vmem:[#allocation0] ss:$8 sm:$0x7] %vm41_vm6, %v40_v13  }
  0x80   :  { %v46_v14 = vpop.permute.xlu0 %45  }
  0x81   :  { %48 = vst.msk [vmem:[#allocation0] ss:$8 sm:$0x7] %vm47_vm7, %v46_v14  }
  0x88   :  { %v53_v15 = vld [vmem:[#allocation0] sm:$0x1]  ;;  %v58_v16 = vld [vmem:[#allocation0 + $0x8] sm:$0x1]  ;;  %v64_v17 = vld [vmem:[#allocation0 + $0x10] sm:$0x1] }
  0x89   :  { %56 = vst [vmem:[%s138_s1] sm:$0x1] %v53_v15  ;;  %78 = vst [vmem:[%s138_s1 + $0x1] sm:$0x1] %v58_v16 }
  0x8a   :  { %79 = vst [vmem:[%s138_s1 + $0x2] sm:$0x1] %v64_v17 }

// kernel: tile.53
= control target key start
LH: loop header
LB: loop body
LE: loop exit
PB: predicated region body
PF: predicated region fallthrough
CT: control target
= control target key end

     0   :  { %s34_s0 = inlined_call_operand.vmem [shape: f32[32], index: 0, kind: input, shape index: {}]   ;;  %s35_s1 = inlined_call_operand.vmem [shape: f32[22,32], index: 1, kind: output, shape index: {}]  }
   0x1   :  { %v4_v0 = vld [vmem:[%s34_s0] ss:$0 sm:$0xff] }
   0x2   :  { %5 = vst [vmem:[%s35_s1] sm:$0xff] %v4_v0  ;;  %10 = vst [vmem:[%s35_s1 + $0x8] sm:$0xff] %v4_v0 }
   0x3   :  { %11 = vst [vmem:[%s35_s1 + $0x10] sm:$0xff] %v4_v0 }

// kernel: mul.15
= control target key start
LH: loop header
LB: loop body
LE: loop exit
PB: predicated region body
PF: predicated region fallthrough
CT: control target
= control target key end

     0   :  { %vm3_vm0 = vcmask 261120   ;;  %s29_s8 = smov 96   ;;  %s30_s13 = smov 32   ;;  %vm9_vm1 = vcmask 1048320   ;;  %vm15_vm2 = vcmask 785920   ;;  %vm21_vm3 = vcmask 523520   ;;  %s66_s0 = inlined_call_operand.vmem [shape: f32[22,32], index: 0, kind: input, shape index: {}]   ;;  %s67_s1 = inlined_call_operand.vmem [shape: f32[704], index: 1, kind: output, shape index: {}]  }
   0x1   :  { %v23_v0 = vld [vmem:[%s66_s0 + $0x3] ss:$4 sm:$0x1f]   ;;  %v25_v1 = vld [vmem:[%s66_s0 + $0x1] ss:$4 sm:$0x3f]  }
   0x2   :  { %7 = vrot.lane.b32.xlu0 %v23_v0, %s29_s8  ;;  %v24_v2 = vld [vmem:[%s66_s0 + $0x2] ss:$4 sm:$0x1f]   ;;  %19 = vrot.lane.b32.xlu1 %v25_v1, %s30_s13  ;;  %v2_v3 = vld [vmem:[%s66_s0] ss:$4 sm:$0x3f]  }
   0x3   :  { %4 = vst.msk [vmem:[%s67_s1] sm:$0x3f] %vm3_vm0, %v2_v3   ;;  %s31_s17 = smov 64  }
   0x6   :  { %13 = vrot.lane.b32.xlu0 %v24_v2, %s31_s17 }
  0x74   :  { %v8_v4 = vpop.permute.xlu0 %7   ;;  %v20_v5 = vpop.permute.xlu1 %19  }
  0x75   :  { %10 = vst.msk [vmem:[%s67_s1] sm:$0x1f] %vm9_vm1, %v8_v4  }
  0x78   :  { %v14_v6 = vpop.permute.xlu0 %13  }
  0x79   :  { %16 = vst.msk [vmem:[%s67_s1] sm:$0x1f] %vm15_vm2, %v14_v6  }
  0x7a   :  { %22 = vst.msk [vmem:[%s67_s1] sm:$0x3f] %vm21_vm3, %v20_v5  }

// kernel: tile.59
= control target key start
LH: loop header
LB: loop body
LE: loop exit
PB: predicated region body
PF: predicated region fallthrough
CT: control target
= control target key end

     0   :  { %s86_s8 = smov 96   ;;  %vm3_vm0 = vcmask 261120   ;;  %s88_s15 = smov 64   ;;  %vm10_vm1 = vcmask 1048320   ;;  %vm18_vm2 = vcmask 785920   ;;  %vm26_vm3 = vcmask 523520   ;;  %s129_s0 = inlined_call_operand.vmem [shape: f32[22,32], index: 0, kind: input, shape index: {}]   ;;  %s130_s1 = inlined_call_operand.vmem [shape: f32[1,704], index: 1, kind: output, shape index: {}]  }
   0x1   :  { %v75_v0 = vld [vmem:[%s129_s0 + $0x3] ss:$4 sm:$0x1f]   ;;  %v76_v1 = vld [vmem:[%s129_s0 + $0x2] ss:$4 sm:$0x1f]  }
   0x2   :  { %8 = vrot.lane.b32.xlu0 %v75_v0, %s86_s8  ;;  %v77_v2 = vld [vmem:[%s129_s0 + $0x1] ss:$4 sm:$0x3f]   ;;  %v2_v3 = vld [vmem:[%s129_s0] ss:$4 sm:$0x3f]  }
   0x3   :  { %s87_s0 = smov 32   ;;  %4 = vst.msk [vmem:[#allocation0] ss:$8 sm:$0xf] %vm3_vm0, %v2_v3  }
   0x4   :  { %24 = vrot.lane.b32.xlu1 %v77_v2, %s87_s0  ;;  %5 = vst.msk [vmem:[#allocation0] ss:$8 sm:$0x30] %vm3_vm0, %v2_v3  }
   0x6   :  { %16 = vrot.lane.b32.xlu0 %v76_v1, %s88_s15 }
  0x74   :  { %v9_v4 = vpop.permute.xlu0 %8  }
  0x75   :  { %11 = vst.msk [vmem:[#allocation0] ss:$8 sm:$0xf] %vm10_vm1, %v9_v4   ;;  %13 = vst.msk [vmem:[#allocation0 + $0x1c] sm:$0x10] %vm10_vm1, %v9_v4  }
  0x76   :  { %v25_v5 = vpop.permute.xlu1 %24  }
  0x78   :  { %v17_v6 = vpop.permute.xlu0 %16  }
  0x79   :  { %19 = vst.msk [vmem:[#allocation0] ss:$8 sm:$0xf] %vm18_vm2, %v17_v6   ;;  %21 = vst.msk [vmem:[#allocation0 + $0x1c] sm:$0x10] %vm18_vm2, %v17_v6  }
  0x7a   :  { %27 = vst.msk [vmem:[#allocation0] ss:$8 sm:$0xf] %vm26_vm3, %v25_v5   ;;  %28 = vst.msk [vmem:[#allocation0] ss:$8 sm:$0x30] %vm26_vm3, %v25_v5  }
  0x81   :  { %v33_v7 = vld [vmem:[#allocation0] sm:$0x1]  ;;  %v38_v8 = vld [vmem:[#allocation0 + $0x8] sm:$0x1]  ;;  %v44_v9 = vld [vmem:[#allocation0 + $0x10] sm:$0x1] }
  0x82   :  { %36 = vst [vmem:[%s130_s1] sm:$0x1] %v33_v7  ;;  %78 = vst [vmem:[%s130_s1 + $0x1] sm:$0x1] %v38_v8  ;;  %v51_v10 = vld [vmem:[#allocation0 + $0x18] sm:$0x1] }
  0x83   :  { %79 = vst [vmem:[%s130_s1 + $0x2] sm:$0x1] %v44_v9  ;;  %v58_v11 = vld [vmem:[#allocation0 + $0x20] sm:$0x1]  ;;  %v65_v12 = vld [vmem:[#allocation0 + $0x28] sm:$0x1] }
  0x84   :  { %80 = vst [vmem:[%s130_s1 + $0x3] sm:$0x1] %v51_v10  ;;  %81 = vst [vmem:[%s130_s1 + $0x4] sm:$0x1] %v58_v11 }
  0x85   :  { %82 = vst [vmem:[%s130_s1 + $0x5] sm:$0x1] %v65_v12 }

// kernel: multiclass_forward.1
= control target key start
LH: loop header
LB: loop body
LE: loop exit
PB: predicated region body
PF: predicated region fallthrough
CT: control target
= control target key end

     0   :  { %v1470_v5 = vmov 0.0   ;;  %v42_v22 = vlaneseq  ;;  %v1471_v27 = vmov 1983009808   ;;  %vm490_vm0 = vcmask 785408   ;;  %s2753_s0 = inlined_call_operand.vmem [shape: f32[4,2,352], index: 0, kind: input, shape index: {}]   ;;  %s2754_s1 = inlined_call_operand.vmem [shape: f32[3,1,352], index: 1, kind: input, shape index: {}]   ;;  %s2755_s2 = inlined_call_operand.vmem [shape: f32[1,352], index: 2, kind: input, shape index: {}]   ;;  %s2756_s3 = inlined_call_operand.vmem [shape: f32[352,704], index: 3, kind: input, shape index: {}]   ;;  %s2757_s4 = inlined_call_operand.vmem [shape: f32[1,704], index: 4, kind: input, shape index: {}]   ;;  %s2758_s5 = inlined_call_operand.vmem [shape: f32[704,64], index: 5, kind: input, shape index: {}]   ;;  %s2759_s6 = inlined_call_operand.vmem [shape: f32[1,64], index: 6, kind: input, shape index: {}]   ;;  %s2760_s7 = inlined_call_operand.vmem [shape: f32[64,3], index: 7, kind: input, shape index: {}]   ;;  %s2761_s8 = inlined_call_operand.vmem [shape: f32[1,3], index: 8, kind: input, shape index: {}]   ;;  %s2762_s9 = inlined_call_operand.hbm [shape: f32[2,3], index: 9, kind: output, shape index: {}]  }
   0x1   :  { %v266_v0 = vld [vmem:[%s2756_s3 + $0x2d8] sm:$0xff]  ;;  %v265_v1 = vld [vmem:[%s2756_s3 + $0x2d0] sm:$0xff]  ;;  %v260_v2 = vld [vmem:[%s2756_s3 + $0x2a8] sm:$0xff]  ;;  %628 = vmatprep.mubr.f32.mxu1 %v1470_v5  ;;  %v56_v28 = vunpack.c.l.s4 %v1471_v27 }
   0x2   :  { %493 = vmatprep.subr.mxu0 %v266_v0  ;;  %v259_v3 = vld [vmem:[%s2756_s3 + $0x2a0] sm:$0xff]  ;;  %v434_v4 = vld [vmem:[%s2756_s3 + $0x818] sm:$0xff]  ;;  %v433_v7 = vld [vmem:[%s2756_s3 + $0x810] sm:$0xff]  ;;  %v1612_v33 = vshrl.u32 %v42_v22, 7 }
   0x3   :  { %494 = vmatpush1.msra.mxu0 %v265_v1  ;;  %v254_v6 = vld [vmem:[%s2756_s3 + $0x278] sm:$0xff]  ;;  %572 = vmatprep.subr.mxu1 %v434_v4  ;;  %v253_v8 = vld [vmem:[%s2756_s3 + $0x270] sm:$0xff]  ;;  %v428_v9 = vld [vmem:[%s2756_s3 + $0x7e8] sm:$0xff]  ;;  %v57_v38 = vunpack.c.0.s8 %v56_v28 }
   0x4   :  { %495 = vmatprep.subr.mxu0 %v260_v2  ;;  %573 = vmatpush1.msra.mxu1 %v433_v7  ;;  %v427_v10 = vld [vmem:[%s2756_s3 + $0x7e0] sm:$0xff]  ;;  %v248_v11 = vld [vmem:[%s2756_s3 + $0x248] sm:$0xff]  ;;  %v422_v12 = vld [vmem:[%s2756_s3 + $0x7b8] sm:$0xff]  ;;  %v1639_v43 = vsub.s32 0, %v1612_v33  ;;  %v1642_v44 = vsub.s32 1, %v1612_v33  ;;  %v1645_v45 = vsub.s32 2, %v1612_v33 }
   0x5   :  { %496 = vmatpush1.msra.mxu0 %v259_v3  ;;  %574 = vmatprep.subr.mxu1 %v428_v9  ;;  %v247_v13 = vld [vmem:[%s2756_s3 + $0x240] sm:$0xff]  ;;  %v421_v14 = vld [vmem:[%s2756_s3 + $0x7b0] sm:$0xff]  ;;  %v416_v15 = vld [vmem:[%s2756_s3 + $0x788] sm:$0xff]  ;;  %v1663_v51 = vsub.s32 %v57_v38, %v1612_v33 }
   0x6   :  { %497 = vmatprep.subr.mxu0 %v254_v6  ;;  %575 = vmatpush1.msra.mxu1 %v427_v10  ;;  %v242_v16 = vld [vmem:[%s2756_s3 + $0x218] sm:$0xff]  ;;  %v415_v17 = vld [vmem:[%s2756_s3 + $0x780] sm:$0xff]  ;;  %v241_v18 = vld [vmem:[%s2756_s3 + $0x210] sm:$0xff] }
   0x7   :  { %498 = vmatpush1.msra.mxu0 %v253_v8  ;;  %576 = vmatprep.subr.mxu1 %v422_v12  ;;  %v410_v19 = vld [vmem:[%s2756_s3 + $0x758] sm:$0xff]  ;;  %v236_v20 = vld [vmem:[%s2756_s3 + $0x1e8] sm:$0xff]  ;;  %v409_v21 = vld [vmem:[%s2756_s3 + $0x750] sm:$0xff] }
   0x8   :  { %499 = vmatprep.subr.mxu0 %v248_v11  ;;  %577 = vmatpush1.msra.mxu1 %v421_v14  ;;  %v235_v23 = vld [vmem:[%s2756_s3 + $0x1e0] sm:$0xff]  ;;  %v404_v24 = vld [vmem:[%s2756_s3 + $0x728] sm:$0xff]  ;;  %v230_v25 = vld [vmem:[%s2756_s3 + $0x1b8] sm:$0xff] }
   0x9   :  { %500 = vmatpush1.msra.mxu0 %v247_v13  ;;  %578 = vmatprep.subr.mxu1 %v416_v15  ;;  %v403_v26 = vld [vmem:[%s2756_s3 + $0x720] sm:$0xff]  ;;  %v229_v29 = vld [vmem:[%s2756_s3 + $0x1b0] sm:$0xff]  ;;  %v398_v30 = vld [vmem:[%s2756_s3 + $0x6f8] sm:$0xff] }
   0xa   :  { %501 = vmatprep.subr.mxu0 %v242_v16  ;;  %579 = vmatpush1.msra.mxu1 %v415_v17  ;;  %v224_v31 = vld [vmem:[%s2756_s3 + $0x188] sm:$0xff]  ;;  %v397_v32 = vld [vmem:[%s2756_s3 + $0x6f0] sm:$0xff]  ;;  %v223_v34 = vld [vmem:[%s2756_s3 + $0x180] sm:$0xff] }
   0xb   :  { %502 = vmatpush1.msra.mxu0 %v241_v18  ;;  %580 = vmatprep.subr.mxu1 %v410_v19  ;;  %v392_v35 = vld [vmem:[%s2756_s3 + $0x6c8] sm:$0xff]  ;;  %v218_v36 = vld [vmem:[%s2756_s3 + $0x158] sm:$0xff]  ;;  %v391_v37 = vld [vmem:[%s2756_s3 + $0x6c0] sm:$0xff] }
   0xc   :  { %503 = vmatprep.subr.mxu0 %v236_v20  ;;  %581 = vmatpush1.msra.mxu1 %v409_v21  ;;  %v217_v39 = vld [vmem:[%s2756_s3 + $0x150] sm:$0xff]  ;;  %v386_v40 = vld [vmem:[%s2756_s3 + $0x698] sm:$0xff]  ;;  %v212_v41 = vld [vmem:[%s2756_s3 + $0x128] sm:$0xff] }
   0xd   :  { %504 = vmatpush1.msra.mxu0 %v235_v23  ;;  %582 = vmatprep.subr.mxu1 %v404_v24  ;;  %v385_v42 = vld [vmem:[%s2756_s3 + $0x690] sm:$0xff]  ;;  %v211_v46 = vld [vmem:[%s2756_s3 + $0x120] sm:$0xff]  ;;  %v380_v47 = vld [vmem:[%s2756_s3 + $0x668] sm:$0xff] }
   0xe   :  { %505 = vmatprep.subr.mxu0 %v230_v25  ;;  %583 = vmatpush1.msra.mxu1 %v403_v26  ;;  %v206_v48 = vld [vmem:[%s2756_s3 + $0xf8] sm:$0xff]  ;;  %v205_v49 = vld [vmem:[%s2756_s3 + $0xf0] sm:$0xff]  ;;  %v379_v50 = vld [vmem:[%s2756_s3 + $0x660] sm:$0xff] }
   0xf   :  { %506 = vmatpush1.msra.mxu0 %v229_v29  ;;  %584 = vmatprep.subr.mxu1 %v398_v30  ;;  %v200_v52 = vld [vmem:[%s2756_s3 + $0xc8] sm:$0xff]  ;;  %v374_v53 = vld [vmem:[%s2756_s3 + $0x638] sm:$0xff]  ;;  %v37_v54 = vld [vmem:[%s2754_s1] sm:$0x7] }
  0x10   :  { %507 = vmatprep.subr.mxu0 %v224_v31  ;;  %585 = vmatpush1.msra.mxu1 %v397_v32  ;;  %v373_v55 = vld [vmem:[%s2756_s3 + $0x630] sm:$0xff]  ;;  %v38_v56 = vld [vmem:[%s2754_s1 + $0x3] sm:$0x7]  ;;  %v39_v57 = vld [vmem:[%s2754_s1 + $0x6] sm:$0x7]  ;;  %v45_v58 = vrot.slane %v37_v54, %v1639_v43  ;;  %v49_v59 = vrot.slane %v37_v54, %v1642_v44  ;;  %v53_v60 = vrot.slane %v37_v54, %v1645_v45 }
  0x11   :  { %508 = vmatpush1.msra.mxu0 %v223_v34  ;;  %586 = vmatprep.subr.mxu1 %v392_v35  ;;  %v199_v61 = vld [vmem:[%s2756_s3 + $0xc0] sm:$0xff]  ;;  %v368_v62 = vld [vmem:[%s2756_s3 + $0x608] sm:$0xff]  ;;  %v76_v0 = vrot.slane %v38_v56, %v1639_v43  ;;  %v80_v1 = vrot.slane %v38_v56, %v1642_v44  ;;  %v84_v2 = vrot.slane %v38_v56, %v1645_v45  ;;  %v194_v3 = vld [vmem:[%s2756_s3 + $0x98] sm:$0xff] }
  0x12   :  { %509 = vmatprep.subr.mxu0 %v218_v36  ;;  %587 = vmatpush1.msra.mxu1 %v391_v37  ;;  %v40_v63 = vld [vmem:[%s2755_s2] sm:$0x7]  ;;  %v54_v6 = vcombine.low %v45_v58, %v49_v59  ;;  %v68_v7 = vrot.slane %v53_v60, %v1663_v51  ;;  %v108_v8 = vrot.slane %v39_v57, %v1639_v43  ;;  %v193_v9 = vld [vmem:[%s2756_s3 + $0x90] sm:$0xff]  ;;  %v268_v10 = vld [vmem:[%s2756_s3 + $0x2e8] sm:$0xff] }
  0x13   :  { %510 = vmatpush1.msra.mxu0 %v217_v39  ;;  %588 = vmatprep.subr.mxu1 %v386_v40  ;;  %v367_v4 = vld [vmem:[%s2756_s3 + $0x600] sm:$0xff]  ;;  %v85_v11 = vcombine.low %v76_v0, %v80_v1  ;;  %v99_v12 = vrot.slane %v84_v2, %v1663_v51  ;;  %v112_v13 = vrot.slane %v39_v57, %v1642_v44  ;;  %v188_v14 = vld [vmem:[%s2756_s3 + $0x68] sm:$0xff]  ;;  %v182_v24 = vld [vmem:[%s2756_s3 + $0x38] sm:$0xff] }
  0x14   :  { %511 = vmatprep.subr.mxu0 %v212_v41  ;;  %589 = vmatpush1.msra.mxu1 %v385_v42  ;;  %v61_v15 = vrot.slane %v54_v6, %v1663_v51  ;;  %v116_v16 = vrot.slane %v39_v57, %v1645_v45  ;;  %v140_v17 = vrot.slane %v40_v63, %v1639_v43  ;;  %v187_v18 = vld [vmem:[%s2756_s3 + $0x60] sm:$0xff]  ;;  %v35_v25 = vld [vmem:[%s2753_s0 + $0xc] sm:$0x3f]  ;;  %v36_v38 = vld [vmem:[%s2753_s0 + $0x12] sm:$0x3f] }
  0x15   :  { %512 = vmatpush1.msra.mxu0 %v211_v46  ;;  %590 = vmatprep.subr.mxu1 %v380_v47  ;;  %v33_v19 = vld [vmem:[%s2753_s0] sm:$0x3f]  ;;  %v34_v20 = vld [vmem:[%s2753_s0 + $0x6] sm:$0x3f]  ;;  %v92_v21 = vrot.slane %v85_v11, %v1663_v51  ;;  %v117_v22 = vcombine.low %v108_v8, %v112_v13  ;;  %v144_v23 = vrot.slane %v40_v63, %v1642_v44  ;;  %v181_v29 = vld [vmem:[%s2756_s3 + $0x30] sm:$0xff] }
  0x16   :  { %513 = vmatprep.subr.mxu0 %v206_v48  ;;  %591 = vmatpush1.msra.mxu1 %v379_v50  ;;  %v69_v26 = vcombine.low %v61_v15, %v68_v7  ;;  %v131_v27 = vrot.slane %v116_v16, %v1663_v51  ;;  %v148_v28 = vrot.slane %v40_v63, %v1645_v45  ;;  %v176_v37 = vld [vmem:[%s2756_s3 + $0x8] sm:$0xff]  ;;  %v175_v46 = vld [vmem:[%s2756_s3] sm:$0xff]  ;;  %v362_v47 = vld [vmem:[%s2756_s3 + $0x5d8] sm:$0xff] }
  0x17   :  { %514 = vmatpush1.msra.mxu0 %v205_v49  ;;  %592 = vmatprep.subr.mxu1 %v374_v53  ;;  %v100_v30 = vcombine.low %v92_v21, %v99_v12  ;;  %v124_v31 = vrot.slane %v117_v22, %v1663_v51  ;;  %v149_v32 = vcombine.low %v140_v17, %v144_v23  ;;  %v361_v53 = vld [vmem:[%s2756_s3 + $0x5d0] sm:$0xff]  ;;  %v355_v57 = vld [vmem:[%s2756_s3 + $0x5a0] sm:$0xff]  ;;  %v350_v59 = vld [vmem:[%s2756_s3 + $0x578] sm:$0xff] }
  0x18   :  { %515 = vmatprep.subr.mxu0 %v200_v52  ;;  %593 = vmatpush1.msra.mxu1 %v373_v55  ;;  %v71_v34 = vmul.f32 %v69_v26, %v33_v19  ;;  %v163_v35 = vrot.slane %v148_v28, %v1663_v51  ;;  %v167_v36 = vmul.f32 %v69_v26, %v34_v20  ;;  %v356_v55 = vld [vmem:[%s2756_s3 + $0x5a8] sm:$0xff]  ;;  %v343_v0 = vld [vmem:[%s2756_s3 + $0x540] sm:$0xff]  ;;  %v338_v2 = vld [vmem:[%s2756_s3 + $0x518] sm:$0xff] }
  0x19   :  { %516 = vmatpush1.msra.mxu0 %v199_v61  ;;  %594 = vmatprep.subr.mxu1 %v368_v62  ;;  %v102_v39 = vmul.f32 %v100_v30, %v34_v20  ;;  %v132_v40 = vcombine.low %v124_v31, %v131_v27  ;;  %v156_v41 = vrot.slane %v149_v32, %v1663_v51  ;;  %v349_v61 = vld [vmem:[%s2756_s3 + $0x570] sm:$0xff]  ;;  %v344_v63 = vld [vmem:[%s2756_s3 + $0x548] sm:$0xff]  ;;  %v331_v7 = vld [vmem:[%s2756_s3 + $0x4e0] sm:$0xff] }
  0x1a   :  { %517 = vmatprep.subr.mxu0 %v194_v3  ;;  %595 = vmatpush1.msra.mxu1 %v367_v4  ;;  %v168_v42 = vmul.f32 %v100_v30, %v35_v25  ;;  %v337_v3 = vld [vmem:[%s2756_s3 + $0x510] sm:$0xff]  ;;  %v332_v6 = vld [vmem:[%s2756_s3 + $0x4e8] sm:$0xff]  ;;  %v267_v12 = vld [vmem:[%s2756_s3 + $0x2e0] sm:$0xff] }
  0x1b   :  { %518 = vmatpush1.msra.mxu0 %v193_v9  ;;  %635 = vmatprep.subr.mxu1 %v268_v10  ;;  %v103_v48 = vadd.f32 %v102_v39, %v71_v34  ;;  %v134_v49 = vmul.f32 %v132_v40, %v35_v25  ;;  %v164_v50 = vcombine.low %v156_v41, %v163_v35  ;;  %v326_v9 = vld [vmem:[%s2756_s3 + $0x4b8] sm:$0xff]  ;;  %v325_v10 = vld [vmem:[%s2756_s3 + $0x4b0] sm:$0xff]  ;;  %v320_v13 = vld [vmem:[%s2756_s3 + $0x488] sm:$0xff] }
  0x1c   :  { %519 = vmatprep.subr.mxu0 %v188_v14  ;;  %v169_v52 = vadd.f32 %v168_v42, %v167_v36  ;;  %v170_v54 = vmul.f32 %v132_v40, %v36_v38  ;;  %v262_v14 = vld [vmem:[%s2756_s3 + $0x2b8] sm:$0xff]  ;;  %v319_v15 = vld [vmem:[%s2756_s3 + $0x480] sm:$0xff]  ;;  %v261_v16 = vld [vmem:[%s2756_s3 + $0x2b0] sm:$0xff] }
  0x1d   :  { %520 = vmatpush1.msra.mxu0 %v187_v18  ;;  %v135_v56 = vadd.f32 %v134_v49, %v103_v48  ;;  %v314_v17 = vld [vmem:[%s2756_s3 + $0x458] sm:$0xff]  ;;  %v256_v18 = vld [vmem:[%s2756_s3 + $0x288] sm:$0xff]  ;;  %v313_v19 = vld [vmem:[%s2756_s3 + $0x450] sm:$0xff] }
  0x1e   :  { %521 = vmatprep.subr.mxu0 %v182_v24  ;;  %v171_v58 = vadd.f32 %v170_v54, %v169_v52  ;;  %v255_v20 = vld [vmem:[%s2756_s3 + $0x280] sm:$0xff]  ;;  %v308_v21 = vld [vmem:[%s2756_s3 + $0x428] sm:$0xff]  ;;  %v250_v22 = vld [vmem:[%s2756_s3 + $0x258] sm:$0xff] }
  0x1f   :  { %522 = vmatpush1.msra.mxu0 %v181_v29  ;;  %v166_v60 = vadd.f32 %v164_v50, %v135_v56  ;;  %v307_v23 = vld [vmem:[%s2756_s3 + $0x420] sm:$0xff]  ;;  %v249_v24 = vld [vmem:[%s2756_s3 + $0x250] sm:$0xff]  ;;  %v302_v25 = vld [vmem:[%s2756_s3 + $0x3f8] sm:$0xff] }
  0x20   :  { %523 = vmatprep.subr.mxu0 %v176_v37  ;;  %v172_v62 = vadd.f32 %v171_v58, %v164_v50  ;;  %v244_v26 = vld [vmem:[%s2756_s3 + $0x228] sm:$0xff]  ;;  %v301_v27 = vld [vmem:[%s2756_s3 + $0x3f0] sm:$0xff]  ;;  %v243_v28 = vld [vmem:[%s2756_s3 + $0x220] sm:$0xff] }
  0x21   :  { %524 = vmatpush1.msra.mxu0 %v175_v46  ;;  %v296_v29 = vld [vmem:[%s2756_s3 + $0x3c8] sm:$0xff]  ;;  %v238_v30 = vld [vmem:[%s2756_s3 + $0x1f8] sm:$0xff]  ;;  %v295_v31 = vld [vmem:[%s2756_s3 + $0x3c0] sm:$0xff] }
  0x22   :  { %525 = vmatprep.subr.mxu0 %v362_v47  ;;  %v173_v1 = vmax.f32 %v166_v60, %v172_v62  ;;  %v237_v32 = vld [vmem:[%s2756_s3 + $0x1f0] sm:$0xff]  ;;  %v290_v34 = vld [vmem:[%s2756_s3 + $0x398] sm:$0xff]  ;;  %v232_v35 = vld [vmem:[%s2756_s3 + $0x1c8] sm:$0xff] }
  0x23   :  { %526 = vmatpush2.msra.mxu0 %v361_v53  ;;  %v289_v36 = vld [vmem:[%s2756_s3 + $0x390] sm:$0xff]  ;;  %v231_v37 = vld [vmem:[%s2756_s3 + $0x1c0] sm:$0xff]  ;;  %v284_v38 = vld [vmem:[%s2756_s3 + $0x368] sm:$0xff] }
  0x24   :  { %527 = vmatprep.subr.mxu0 %v356_v55  ;;  %v1784_v4 = vmax.f32 %v173_v1, 0.0  ;;  %v226_v39 = vld [vmem:[%s2756_s3 + $0x198] sm:$0xff]  ;;  %v283_v40 = vld [vmem:[%s2756_s3 + $0x360] sm:$0xff]  ;;  %v225_v42 = vld [vmem:[%s2756_s3 + $0x190] sm:$0xff] }
  0x25   :  { %528 = vmatpush2.msra.mxu0 %v355_v57  ;;  %v278_v46 = vld [vmem:[%s2756_s3 + $0x338] sm:$0xff]  ;;  %v220_v47 = vld [vmem:[%s2756_s3 + $0x168] sm:$0xff]  ;;  %v219_v48 = vld [vmem:[%s2756_s3 + $0x160] sm:$0xff] }
  0x26   :  { %529 = vmatprep.subr.mxu0 %v350_v59  ;;  %v472_v8 = vcombine.high %v1784_v4, %v1784_v4  ;;  %v1891_v41 = vrot.slane %v1784_v4, %v1663_v51  ;;  %v272_v49 = vld [vmem:[%s2756_s3 + $0x308] sm:$0xff]  ;;  %v214_v50 = vld [vmem:[%s2756_s3 + $0x138] sm:$0xff]  ;;  %v271_v52 = vld [vmem:[%s2756_s3 + $0x300] sm:$0xff] }
  0x27   :  { %530 = vmatpush2.msra.mxu0 %v349_v61  ;;  %v213_v54 = vld [vmem:[%s2756_s3 + $0x130] sm:$0xff]  ;;  %v208_v55 = vld [vmem:[%s2756_s3 + $0x108] sm:$0xff]  ;;  %v207_v56 = vld [vmem:[%s2756_s3 + $0x100] sm:$0xff] }
  0x28   :  { %531 = vmatprep.subr.mxu0 %v344_v63  ;;  %v1801_v11 = vrot.slane %v472_v8, %v1663_v51  ;;  %v277_v51 = vld [vmem:[%s2756_s3 + $0x330] sm:$0xff]  ;;  %v1919_v53 = vcombine.high %v1891_v41, %v1891_v41  ;;  %v436_v57 = vld [vmem:[%s2756_s3 + $0x828] sm:$0xff]  ;;  %v202_v58 = vld [vmem:[%s2756_s3 + $0xd8] sm:$0xff] }
  0x29   :  { %532 = vmatpush2.msra.mxu0 %v343_v0  ;;  %v435_v59 = vld [vmem:[%s2756_s3 + $0x820] sm:$0xff]  ;;  %v201_v60 = vld [vmem:[%s2756_s3 + $0xd0] sm:$0xff]  ;;  %v430_v61 = vld [vmem:[%s2756_s3 + $0x7f8] sm:$0xff] }
  0x2a   :  { %533 = vmatprep.subr.mxu0 %v338_v2  ;;  %1339 = vmatmul.mubr.msk.f32.vlgmr.msra.gmra.mxu1 %vm490_vm0, %v1801_v11  ;;  %v196_v62 = vld [vmem:[%s2756_s3 + $0xa8] sm:$0xff]  ;;  %v429_v63 = vld [vmem:[%s2756_s3 + $0x7f0] sm:$0xff]  ;;  %v195_v0 = vld [vmem:[%s2756_s3 + $0xa0] sm:$0xff] }
  0x2b   :  { %534 = vmatpush2.msra.mxu0 %v337_v3  ;;  %636 = vmatpush1.msra.mxu1 %v267_v12  ;;  %v424_v1 = vld [vmem:[%s2756_s3 + $0x7c8] sm:$0xff]  ;;  %v190_v2 = vld [vmem:[%s2756_s3 + $0x78] sm:$0xff]  ;;  %v423_v3 = vld [vmem:[%s2756_s3 + $0x7c0] sm:$0xff] }
  0x2c   :  { %535 = vmatprep.subr.mxu0 %v332_v6  ;;  %637 = vmatprep.subr.mxu1 %v262_v14  ;;  %v189_v4 = vld [vmem:[%s2756_s3 + $0x70] sm:$0xff]  ;;  %v418_v6 = vld [vmem:[%s2756_s3 + $0x798] sm:$0xff] }
  0x2d   :  { %536 = vmatpush2.msra.mxu0 %v331_v7  ;;  %638 = vmatpush1.msra.mxu1 %v261_v16  ;;  %v184_v7 = vld [vmem:[%s2756_s3 + $0x48] sm:$0xff]  ;;  %v417_v8 = vld [vmem:[%s2756_s3 + $0x790] sm:$0xff]  ;;  %v178_v12 = vld [vmem:[%s2756_s3 + $0x18] sm:$0xff] }
  0x2e   :  { %537 = vmatprep.subr.mxu0 %v326_v9  ;;  %639 = vmatprep.subr.mxu1 %v256_v18  ;;  %v183_v9 = vld [vmem:[%s2756_s3 + $0x40] sm:$0xff]  ;;  %v177_v14 = vld [vmem:[%s2756_s3 + $0x10] sm:$0xff]  ;;  %v364_v16 = vld [vmem:[%s2756_s3 + $0x5e8] sm:$0xff] }
  0x2f   :  { %538 = vmatpush2.msra.mxu0 %v325_v10  ;;  %640 = vmatpush1.msra.mxu1 %v255_v20  ;;  %v412_v10 = vld [vmem:[%s2756_s3 + $0x768] sm:$0xff]  ;;  %v363_v18 = vld [vmem:[%s2756_s3 + $0x5e0] sm:$0xff]  ;;  %v358_v20 = vld [vmem:[%s2756_s3 + $0x5b8] sm:$0xff] }
  0x30   :  { %539 = vmatprep.subr.mxu0 %v320_v13  ;;  %641 = vmatprep.subr.mxu1 %v250_v22  ;;  %v411_v13 = vld [vmem:[%s2756_s3 + $0x760] sm:$0xff]  ;;  %v357_v22 = vld [vmem:[%s2756_s3 + $0x5b0] sm:$0xff] }
  0x31   :  { %540 = vmatpush2.msra.mxu0 %v319_v15  ;;  %642 = vmatpush1.msra.mxu1 %v249_v24  ;;  %v406_v15 = vld [vmem:[%s2756_s3 + $0x738] sm:$0xff]  ;;  %v352_v24 = vld [vmem:[%s2756_s3 + $0x588] sm:$0xff] }
  0x32   :  { %541 = vmatprep.subr.mxu0 %v314_v17  ;;  %643 = vmatprep.subr.mxu1 %v244_v26  ;;  %v405_v17 = vld [vmem:[%s2756_s3 + $0x730] sm:$0xff]  ;;  %v351_v26 = vld [vmem:[%s2756_s3 + $0x580] sm:$0xff] }
  0x33   :  { %542 = vmatpush2.msra.mxu0 %v313_v19  ;;  %644 = vmatpush1.msra.mxu1 %v243_v28  ;;  %v400_v19 = vld [vmem:[%s2756_s3 + $0x708] sm:$0xff]  ;;  %v346_v28 = vld [vmem:[%s2756_s3 + $0x558] sm:$0xff] }
  0x34   :  { %543 = vmatprep.subr.mxu0 %v308_v21  ;;  %645 = vmatprep.subr.mxu1 %v238_v30  ;;  %v399_v21 = vld [vmem:[%s2756_s3 + $0x700] sm:$0xff]  ;;  %v345_v30 = vld [vmem:[%s2756_s3 + $0x550] sm:$0xff] }
  0x35   :  { %544 = vmatpush2.msra.mxu0 %v307_v23  ;;  %646 = vmatpush1.msra.mxu1 %v237_v32  ;;  %v394_v23 = vld [vmem:[%s2756_s3 + $0x6d8] sm:$0xff]  ;;  %v340_v32 = vld [vmem:[%s2756_s3 + $0x528] sm:$0xff] }
  0x36   :  { %545 = vmatprep.subr.mxu0 %v302_v25  ;;  %647 = vmatprep.subr.mxu1 %v232_v35  ;;  %v393_v25 = vld [vmem:[%s2756_s3 + $0x6d0] sm:$0xff]  ;;  %v339_v35 = vld [vmem:[%s2756_s3 + $0x520] sm:$0xff] }
  0x37   :  { %546 = vmatpush2.msra.mxu0 %v301_v27  ;;  %648 = vmatpush1.msra.mxu1 %v231_v37  ;;  %v388_v27 = vld [vmem:[%s2756_s3 + $0x6a8] sm:$0xff]  ;;  %v334_v37 = vld [vmem:[%s2756_s3 + $0x4f8] sm:$0xff] }
  0x38   :  { %547 = vmatprep.subr.mxu0 %v296_v29  ;;  %649 = vmatprep.subr.mxu1 %v226_v39  ;;  %v387_v29 = vld [vmem:[%s2756_s3 + $0x6a0] sm:$0xff]  ;;  %v333_v39 = vld [vmem:[%s2756_s3 + $0x4f0] sm:$0xff] }
  0x39   :  { %548 = vmatpush2.msra.mxu0 %v295_v31  ;;  %650 = vmatpush1.msra.mxu1 %v225_v42  ;;  %v382_v31 = vld [vmem:[%s2756_s3 + $0x678] sm:$0xff]  ;;  %v328_v42 = vld [vmem:[%s2756_s3 + $0x4c8] sm:$0xff] }
  0x3a   :  { %549 = vmatprep.subr.mxu0 %v290_v34  ;;  %651 = vmatprep.subr.mxu1 %v220_v47  ;;  %v381_v34 = vld [vmem:[%s2756_s3 + $0x670] sm:$0xff]  ;;  %v327_v47 = vld [vmem:[%s2756_s3 + $0x4c0] sm:$0xff] }
  0x3b   :  { %550 = vmatpush2.msra.mxu0 %v289_v36  ;;  %652 = vmatpush1.msra.mxu1 %v219_v48  ;;  %v376_v36 = vld [vmem:[%s2756_s3 + $0x648] sm:$0xff]  ;;  %v321_v48 = vld [vmem:[%s2756_s3 + $0x490] sm:$0xff] }
  0x3c   :  { %551 = vmatprep.subr.mxu0 %v284_v38  ;;  %653 = vmatprep.subr.mxu1 %v214_v50  ;;  %v375_v38 = vld [vmem:[%s2756_s3 + $0x640] sm:$0xff]  ;;  %v316_v50 = vld [vmem:[%s2756_s3 + $0x468] sm:$0xff] }
  0x3d   :  { %552 = vmatpush2.msra.mxu0 %v283_v40  ;;  %654 = vmatpush1.msra.mxu1 %v213_v54  ;;  %v370_v40 = vld [vmem:[%s2756_s3 + $0x618] sm:$0xff]  ;;  %v315_v54 = vld [vmem:[%s2756_s3 + $0x460] sm:$0xff] }
  0x3e   :  { %553 = vmatprep.subr.mxu0 %v278_v46  ;;  %557 = vmatprep.mubr.f32.mxu0 %v1919_v53  ;;  %v369_v46 = vld [vmem:[%s2756_s3 + $0x610] sm:$0xff] }
  0x3f   :  { %554 = vmatpush2.msra.mxu0 %v277_v51  ;;  %655 = vmatprep.subr.mxu1 %v208_v55  ;;  %v322_v51 = vld [vmem:[%s2756_s3 + $0x498] sm:$0xff]  ;;  %v264_v55 = vld [vmem:[%s2756_s3 + $0x2c8] sm:$0xff] }
  0x40   :  { %555 = vmatprep.subr.mxu0 %v272_v49  ;;  %656 = vmatpush1.msra.mxu1 %v207_v56  ;;  %v270_v49 = vld [vmem:[%s2756_s3 + $0x2f8] sm:$0xff] }
  0x41   :  { %556 = vmatpush2.msra.mxu0 %v271_v52  ;;  %657 = vmatprep.subr.mxu1 %v202_v58  ;;  %v269_v52 = vld [vmem:[%s2756_s3 + $0x2f0] sm:$0xff]  ;;  %v310_v56 = vld [vmem:[%s2756_s3 + $0x438] sm:$0xff]  ;;  %v263_v58 = vld [vmem:[%s2756_s3 + $0x2c0] sm:$0xff] }
  0x42   :  { %558 = vmatmul.mubr.f32.vlgmr.msra.gmra.mxu0 %v1891_v41  ;;  %714 = vmatprep.subr.mxu0 %v436_v57  ;;  %v309_v57 = vld [vmem:[%s2756_s3 + $0x430] sm:$0xff] }
  0x43   :  { %715 = vmatpush1.msra.mxu0 %v435_v59  ;;  %658 = vmatpush1.msra.mxu1 %v201_v60  ;;  %v304_v59 = vld [vmem:[%s2756_s3 + $0x408] sm:$0xff]  ;;  %v258_v60 = vld [vmem:[%s2756_s3 + $0x298] sm:$0xff] }
  0x44   :  { %716 = vmatprep.subr.mxu0 %v430_v61  ;;  %659 = vmatprep.subr.mxu1 %v196_v62  ;;  %v303_v61 = vld [vmem:[%s2756_s3 + $0x400] sm:$0xff]  ;;  %v257_v62 = vld [vmem:[%s2756_s3 + $0x290] sm:$0xff] }
  0x45   :  { %717 = vmatpush1.msra.mxu0 %v429_v63  ;;  %660 = vmatpush1.msra.mxu1 %v195_v0  ;;  %v298_v63 = vld [vmem:[%s2756_s3 + $0x3d8] sm:$0xff]  ;;  %v252_v0 = vld [vmem:[%s2756_s3 + $0x268] sm:$0xff] }
  0x46   :  { %718 = vmatprep.subr.mxu0 %v424_v1  ;;  %661 = vmatprep.subr.mxu1 %v190_v2  ;;  %v297_v1 = vld [vmem:[%s2756_s3 + $0x3d0] sm:$0xff]  ;;  %v251_v2 = vld [vmem:[%s2756_s3 + $0x260] sm:$0xff] }
  0x47   :  { %719 = vmatpush1.msra.mxu0 %v423_v3  ;;  %662 = vmatpush1.msra.mxu1 %v189_v4 }
  0x48   :  { %720 = vmatprep.subr.mxu0 %v418_v6  ;;  %663 = vmatprep.subr.mxu1 %v184_v7 }
  0x49   :  { %721 = vmatpush1.msra.mxu0 %v417_v8  ;;  %664 = vmatpush1.msra.mxu1 %v183_v9 }
  0x4a   :  { %722 = vmatprep.subr.mxu0 %v412_v10  ;;  %665 = vmatprep.subr.mxu1 %v178_v12 }
  0x4b   :  { %723 = vmatpush1.msra.mxu0 %v411_v13  ;;  %666 = vmatpush1.msra.mxu1 %v177_v14 }
  0x4c   :  { %724 = vmatprep.subr.mxu0 %v406_v15  ;;  %667 = vmatprep.subr.mxu1 %v364_v16 }
  0x4d   :  { %725 = vmatpush1.msra.mxu0 %v405_v17  ;;  %668 = vmatpush2.msra.mxu1 %v363_v18 }
  0x4e   :  { %726 = vmatprep.subr.mxu0 %v400_v19  ;;  %669 = vmatprep.subr.mxu1 %v358_v20 }
  0x4f   :  { %727 = vmatpush1.msra.mxu0 %v399_v21  ;;  %670 = vmatpush2.msra.mxu1 %v357_v22 }
  0x50   :  { %728 = vmatprep.subr.mxu0 %v394_v23  ;;  %671 = vmatprep.subr.mxu1 %v352_v24 }
  0x51   :  { %729 = vmatpush1.msra.mxu0 %v393_v25  ;;  %672 = vmatpush2.msra.mxu1 %v351_v26 }
  0x52   :  { %730 = vmatprep.subr.mxu0 %v388_v27  ;;  %673 = vmatprep.subr.mxu1 %v346_v28 }
  0x53   :  { %731 = vmatpush1.msra.mxu0 %v387_v29  ;;  %674 = vmatpush2.msra.mxu1 %v345_v30 }
  0x54   :  { %732 = vmatprep.subr.mxu0 %v382_v31  ;;  %675 = vmatprep.subr.mxu1 %v340_v32 }
  0x55   :  { %733 = vmatpush1.msra.mxu0 %v381_v34  ;;  %676 = vmatpush2.msra.mxu1 %v339_v35 }
  0x56   :  { %734 = vmatprep.subr.mxu0 %v376_v36  ;;  %677 = vmatprep.subr.mxu1 %v334_v37 }
  0x57   :  { %735 = vmatpush1.msra.mxu0 %v375_v38  ;;  %678 = vmatpush2.msra.mxu1 %v333_v39 }
  0x58   :  { %736 = vmatprep.subr.mxu0 %v370_v40  ;;  %679 = vmatprep.subr.mxu1 %v328_v42 }
  0x59   :  { %737 = vmatpush1.msra.mxu0 %v369_v46  ;;  %680 = vmatpush2.msra.mxu1 %v327_v47 }
  0x5a   :  { %770 = vmatprep.mubr.f32.mxu0 %v1470_v5  ;;  %681 = vmatprep.subr.mxu1 %v322_v51 }
  0x5b   :  { %1340 = vmatmul.mubr.msk.f32.vlgmr.msra.gmra.mxu0 %vm490_vm0, %v1801_v11  ;;  %682 = vmatpush2.msra.mxu1 %v321_v48 }
  0x5c   :  { %777 = vmatprep.subr.mxu0 %v270_v49  ;;  %683 = vmatprep.subr.mxu1 %v316_v50 }
  0x5d   :  { %778 = vmatpush1.msra.mxu0 %v269_v52  ;;  %684 = vmatpush2.msra.mxu1 %v315_v54 }
  0x5e   :  { %779 = vmatprep.subr.mxu0 %v264_v55  ;;  %685 = vmatprep.subr.mxu1 %v310_v56 }
  0x5f   :  { %699 = vmatprep.mubr.f32.mxu1 %v1919_v53  ;;  %686 = vmatpush2.msra.mxu1 %v309_v57 }
  0x60   :  { %780 = vmatpush1.msra.mxu0 %v263_v58  ;;  %687 = vmatprep.subr.mxu1 %v304_v59 }
  0x61   :  { %781 = vmatprep.subr.mxu0 %v258_v60 }
  0x62   :  { %14 = vsyncpa [#allocation3], 0  ;;  %688 = vmatpush2.msra.mxu1 %v303_v61  ;;  %v292_v3 = vld [vmem:[%s2756_s3 + $0x3a8] sm:$0xff]  ;;  %782 = vmatpush1.msra.mxu0 %v257_v62  ;;  %v246_v4 = vld [vmem:[%s2756_s3 + $0x238] sm:$0xff]  ;;  %vm1020_vm1 = vcmask 523264   ;;  %vm1472_vm2 = vmmov 0  }
  0x63   :  { %689 = vmatprep.subr.mxu1 %v298_v63  ;;  %v291_v6 = vld [vmem:[%s2756_s3 + $0x3a0] sm:$0xff]  ;;  %783 = vmatprep.subr.mxu0 %v252_v0  ;;  %v245_v7 = vld [vmem:[%s2756_s3 + $0x230] sm:$0xff]  ;;  %v286_v8 = vld [vmem:[%s2756_s3 + $0x378] sm:$0xff]  ;;  %vm1323_vm3 = vcmask 17408  }
  0x64   :  { %690 = vmatpush2.msra.mxu1 %v297_v1  ;;  %784 = vmatpush1.msra.mxu0 %v251_v2  ;;  %v240_v9 = vld [vmem:[%s2756_s3 + $0x208] sm:$0xff]  ;;  %v285_v10 = vld [vmem:[%s2756_s3 + $0x370] sm:$0xff]  ;;  %v239_v12 = vld [vmem:[%s2756_s3 + $0x200] sm:$0xff] }
  0x65   :  { %691 = vmatprep.subr.mxu1 %v292_v3  ;;  %785 = vmatprep.subr.mxu0 %v246_v4  ;;  %v280_v13 = vld [vmem:[%s2756_s3 + $0x348] sm:$0xff]  ;;  %v234_v14 = vld [vmem:[%s2756_s3 + $0x1d8] sm:$0xff]  ;;  %v279_v15 = vld [vmem:[%s2756_s3 + $0x340] sm:$0xff] }
  0x66   :  { %692 = vmatpush2.msra.mxu1 %v291_v6  ;;  %786 = vmatpush1.msra.mxu0 %v245_v7  ;;  %v233_v16 = vld [vmem:[%s2756_s3 + $0x1d0] sm:$0xff]  ;;  %v274_v17 = vld [vmem:[%s2756_s3 + $0x318] sm:$0xff]  ;;  %v228_v18 = vld [vmem:[%s2756_s3 + $0x1a8] sm:$0xff] }
  0x67   :  { %693 = vmatprep.subr.mxu1 %v286_v8  ;;  %787 = vmatprep.subr.mxu0 %v240_v9  ;;  %v273_v19 = vld [vmem:[%s2756_s3 + $0x310] sm:$0xff]  ;;  %v227_v20 = vld [vmem:[%s2756_s3 + $0x1a0] sm:$0xff]  ;;  %v222_v21 = vld [vmem:[%s2756_s3 + $0x178] sm:$0xff] }
  0x68   :  { %694 = vmatpush2.msra.mxu1 %v285_v10  ;;  %788 = vmatpush1.msra.mxu0 %v239_v12  ;;  %v221_v22 = vld [vmem:[%s2756_s3 + $0x170] sm:$0xff]  ;;  %v438_v23 = vld [vmem:[%s2756_s3 + $0x838] sm:$0xff]  ;;  %v216_v24 = vld [vmem:[%s2756_s3 + $0x148] sm:$0xff] }
  0x69   :  { %695 = vmatprep.subr.mxu1 %v280_v13  ;;  %789 = vmatprep.subr.mxu0 %v234_v14  ;;  %v437_v25 = vld [vmem:[%s2756_s3 + $0x830] sm:$0xff]  ;;  %v215_v26 = vld [vmem:[%s2756_s3 + $0x140] sm:$0xff]  ;;  %v432_v27 = vld [vmem:[%s2756_s3 + $0x808] sm:$0xff] }
  0x6a   :  { %696 = vmatpush2.msra.mxu1 %v279_v15  ;;  %790 = vmatpush1.msra.mxu0 %v233_v16  ;;  %v210_v28 = vld [vmem:[%s2756_s3 + $0x118] sm:$0xff]  ;;  %v431_v29 = vld [vmem:[%s2756_s3 + $0x800] sm:$0xff]  ;;  %v209_v30 = vld [vmem:[%s2756_s3 + $0x110] sm:$0xff] }
  0x6b   :  { %697 = vmatprep.subr.mxu1 %v274_v17  ;;  %791 = vmatprep.subr.mxu0 %v228_v18  ;;  %v426_v31 = vld [vmem:[%s2756_s3 + $0x7d8] sm:$0xff]  ;;  %v204_v32 = vld [vmem:[%s2756_s3 + $0xe8] sm:$0xff]  ;;  %v425_v34 = vld [vmem:[%s2756_s3 + $0x7d0] sm:$0xff] }
  0x6c   :  { %698 = vmatpush2.msra.mxu1 %v273_v19  ;;  %792 = vmatpush1.msra.mxu0 %v227_v20  ;;  %v203_v35 = vld [vmem:[%s2756_s3 + $0xe0] sm:$0xff]  ;;  %v420_v36 = vld [vmem:[%s2756_s3 + $0x7a8] sm:$0xff]  ;;  %v198_v37 = vld [vmem:[%s2756_s3 + $0xb8] sm:$0xff] }
  0x6d   :  { %700 = vmatmul.mubr.f32.vlgmr.msra.gmra.mxu1 %v1891_v41  ;;  %793 = vmatprep.subr.mxu0 %v222_v21  ;;  %v419_v38 = vld [vmem:[%s2756_s3 + $0x7a0] sm:$0xff]  ;;  %v197_v39 = vld [vmem:[%s2756_s3 + $0xb0] sm:$0xff]  ;;  %v414_v40 = vld [vmem:[%s2756_s3 + $0x778] sm:$0xff] }
  0x6e   :  { %794 = vmatpush1.msra.mxu0 %v221_v22  ;;  %856 = vmatprep.subr.mxu1 %v438_v23  ;;  %v192_v42 = vld [vmem:[%s2756_s3 + $0x88] sm:$0xff]  ;;  %v413_v46 = vld [vmem:[%s2756_s3 + $0x770] sm:$0xff]  ;;  %v191_v47 = vld [vmem:[%s2756_s3 + $0x80] sm:$0xff] }
  0x6f   :  { %795 = vmatprep.subr.mxu0 %v216_v24  ;;  %857 = vmatpush1.msra.mxu1 %v437_v25  ;;  %v408_v51 = vld [vmem:[%s2756_s3 + $0x748] sm:$0xff]  ;;  %v186_v48 = vld [vmem:[%s2756_s3 + $0x58] sm:$0xff]  ;;  %v407_v49 = vld [vmem:[%s2756_s3 + $0x740] sm:$0xff] }
  0x70   :  { %796 = vmatpush1.msra.mxu0 %v215_v26  ;;  %858 = vmatprep.subr.mxu1 %v432_v27  ;;  %v185_v50 = vld [vmem:[%s2756_s3 + $0x50] sm:$0xff]  ;;  %v402_v52 = vld [vmem:[%s2756_s3 + $0x718] sm:$0xff]  ;;  %v180_v54 = vld [vmem:[%s2756_s3 + $0x28] sm:$0xff] }
  0x71   :  { %797 = vmatprep.subr.mxu0 %v210_v28  ;;  %859 = vmatpush1.msra.mxu1 %v431_v29  ;;  %v401_v55 = vld [vmem:[%s2756_s3 + $0x710] sm:$0xff]  ;;  %v179_v56 = vld [vmem:[%s2756_s3 + $0x20] sm:$0xff]  ;;  %v396_v57 = vld [vmem:[%s2756_s3 + $0x6e8] sm:$0xff] }
  0x72   :  { %798 = vmatpush1.msra.mxu0 %v209_v30  ;;  %860 = vmatprep.subr.mxu1 %v426_v31  ;;  %v366_v58 = vld [vmem:[%s2756_s3 + $0x5f8] sm:$0xff]  ;;  %v395_v59 = vld [vmem:[%s2756_s3 + $0x6e0] sm:$0xff]  ;;  %v365_v60 = vld [vmem:[%s2756_s3 + $0x5f0] sm:$0xff] }
  0x73   :  { %799 = vmatprep.subr.mxu0 %v204_v32  ;;  %861 = vmatpush1.msra.mxu1 %v425_v34  ;;  %v390_v61 = vld [vmem:[%s2756_s3 + $0x6b8] sm:$0xff]  ;;  %v360_v62 = vld [vmem:[%s2756_s3 + $0x5c8] sm:$0xff]  ;;  %v389_v63 = vld [vmem:[%s2756_s3 + $0x6b0] sm:$0xff] }
  0x74   :  { %800 = vmatpush1.msra.mxu0 %v203_v35  ;;  %862 = vmatprep.subr.mxu1 %v420_v36  ;;  %v359_v0 = vld [vmem:[%s2756_s3 + $0x5c0] sm:$0xff]  ;;  %v384_v1 = vld [vmem:[%s2756_s3 + $0x688] sm:$0xff]  ;;  %v354_v2 = vld [vmem:[%s2756_s3 + $0x598] sm:$0xff] }
  0x75   :  { %801 = vmatprep.subr.mxu0 %v198_v37  ;;  %863 = vmatpush1.msra.mxu1 %v419_v38  ;;  %v383_v3 = vld [vmem:[%s2756_s3 + $0x680] sm:$0xff]  ;;  %v353_v4 = vld [vmem:[%s2756_s3 + $0x590] sm:$0xff]  ;;  %v378_v6 = vld [vmem:[%s2756_s3 + $0x658] sm:$0xff] }
  0x76   :  { %802 = vmatpush1.msra.mxu0 %v197_v39  ;;  %864 = vmatprep.subr.mxu1 %v414_v40  ;;  %v348_v7 = vld [vmem:[%s2756_s3 + $0x568] sm:$0xff]  ;;  %v377_v8 = vld [vmem:[%s2756_s3 + $0x650] sm:$0xff]  ;;  %v347_v9 = vld [vmem:[%s2756_s3 + $0x560] sm:$0xff] }
  0x77   :  { %803 = vmatprep.subr.mxu0 %v192_v42  ;;  %865 = vmatpush1.msra.mxu1 %v413_v46  ;;  %v372_v10 = vld [vmem:[%s2756_s3 + $0x628] sm:$0xff]  ;;  %v342_v12 = vld [vmem:[%s2756_s3 + $0x538] sm:$0xff]  ;;  %v341_v13 = vld [vmem:[%s2756_s3 + $0x530] sm:$0xff] }
  0x78   :  { %804 = vmatpush1.msra.mxu0 %v191_v47  ;;  %866 = vmatprep.subr.mxu1 %v408_v51  ;;  %v371_v14 = vld [vmem:[%s2756_s3 + $0x620] sm:$0xff]  ;;  %v336_v15 = vld [vmem:[%s2756_s3 + $0x508] sm:$0xff]  ;;  %v330_v17 = vld [vmem:[%s2756_s3 + $0x4d8] sm:$0xff] }
  0x79   :  { %805 = vmatprep.subr.mxu0 %v186_v48  ;;  %867 = vmatpush1.msra.mxu1 %v407_v49  ;;  %v335_v16 = vld [vmem:[%s2756_s3 + $0x500] sm:$0xff]  ;;  %v956_v18 = vld [vmem:[%s2758_s5 + $0xf8] sm:$0xff]  ;;  %v329_v19 = vld [vmem:[%s2756_s3 + $0x4d0] sm:$0xff] }
  0x7a   :  { %806 = vmatpush1.msra.mxu0 %v185_v50  ;;  %868 = vmatprep.subr.mxu1 %v402_v52  ;;  %v324_v20 = vld [vmem:[%s2756_s3 + $0x4a8] sm:$0xff]  ;;  %v955_v21 = vld [vmem:[%s2758_s5 + $0xf0] sm:$0xff]  ;;  %v323_v22 = vld [vmem:[%s2756_s3 + $0x4a0] sm:$0xff] }
  0x7b   :  { %807 = vmatprep.subr.mxu0 %v180_v54  ;;  %869 = vmatpush1.msra.mxu1 %v401_v55  ;;  %v939_v23 = vld [vmem:[%s2758_s5 + $0x70] sm:$0xff]  ;;  %v318_v24 = vld [vmem:[%s2756_s3 + $0x478] sm:$0xff]  ;;  %v938_v26 = vld [vmem:[%s2758_s5 + $0x68] sm:$0xff] }
  0x7c   :  { %808 = vmatpush1.msra.mxu0 %v179_v56  ;;  %870 = vmatprep.subr.mxu1 %v396_v57  ;;  %v317_v25 = vld [vmem:[%s2756_s3 + $0x470] sm:$0xff]  ;;  %v312_v27 = vld [vmem:[%s2756_s3 + $0x448] sm:$0xff]  ;;  %v953_v28 = vld [vmem:[%s2758_s5 + $0xe0] sm:$0xff] }
  0x7d   :  { %809 = vmatprep.subr.mxu0 %v366_v58  ;;  %871 = vmatpush1.msra.mxu1 %v395_v59  ;;  %v311_v29 = vld [vmem:[%s2756_s3 + $0x440] sm:$0xff]  ;;  %v306_v31 = vld [vmem:[%s2756_s3 + $0x418] sm:$0xff]  ;;  %v305_v34 = vld [vmem:[%s2756_s3 + $0x410] sm:$0xff] }
  0x7e   :  { %810 = vmatpush2.msra.mxu0 %v365_v60  ;;  %872 = vmatprep.subr.mxu1 %v390_v61  ;;  %v937_v30 = vld [vmem:[%s2758_s5 + $0x60] sm:$0xff]  ;;  %v952_v32 = vld [vmem:[%s2758_s5 + $0xd8] sm:$0xff]  ;;  %v300_v36 = vld [vmem:[%s2756_s3 + $0x3e8] sm:$0xff] }
  0x7f   :  { %811 = vmatprep.subr.mxu0 %v360_v62  ;;  %873 = vmatpush1.msra.mxu1 %v389_v63  ;;  %v936_v35 = vld [vmem:[%s2758_s5 + $0x58] sm:$0xff]  ;;  %v951_v37 = vld [vmem:[%s2758_s5 + $0xd0] sm:$0xff]  ;;  %v299_v38 = vld [vmem:[%s2756_s3 + $0x3e0] sm:$0xff] }
  0x80   :  { %812 = vmatpush2.msra.mxu0 %v359_v0  ;;  %874 = vmatprep.subr.mxu1 %v384_v1  ;;  %v935_v39 = vld [vmem:[%s2758_s5 + $0x50] sm:$0xff]  ;;  %v294_v40 = vld [vmem:[%s2756_s3 + $0x3b8] sm:$0xff]  ;;  %v950_v42 = vld [vmem:[%s2758_s5 + $0xc8] sm:$0xff] }
  0x81   :  { %813 = vmatprep.subr.mxu0 %v354_v2  ;;  %875 = vmatpush1.msra.mxu1 %v383_v3  ;;  %v293_v46 = vld [vmem:[%s2756_s3 + $0x3b0] sm:$0xff]  ;;  %v934_v47 = vld [vmem:[%s2758_s5 + $0x48] sm:$0xff]  ;;  %v949_v48 = vld [vmem:[%s2758_s5 + $0xc0] sm:$0xff] }
  0x82   :  { %814 = vmatpush2.msra.mxu0 %v353_v4  ;;  %876 = vmatprep.subr.mxu1 %v378_v6  ;;  %v288_v51 = vld [vmem:[%s2756_s3 + $0x388] sm:$0xff]  ;;  %v287_v49 = vld [vmem:[%s2756_s3 + $0x380] sm:$0xff]  ;;  %v282_v52 = vld [vmem:[%s2756_s3 + $0x358] sm:$0xff] }
  0x83   :  { %815 = vmatprep.subr.mxu0 %v348_v7  ;;  %877 = vmatpush1.msra.mxu1 %v377_v8  ;;  %v933_v50 = vld [vmem:[%s2758_s5 + $0x40] sm:$0xff]  ;;  %v948_v54 = vld [vmem:[%s2758_s5 + $0xb8] sm:$0xff]  ;;  %v281_v55 = vld [vmem:[%s2756_s3 + $0x350] sm:$0xff] }
  0x84   :  { %816 = vmatpush2.msra.mxu0 %v347_v9  ;;  %878 = vmatprep.subr.mxu1 %v372_v10  ;;  %v932_v56 = vld [vmem:[%s2758_s5 + $0x38] sm:$0xff]  ;;  %v276_v57 = vld [vmem:[%s2756_s3 + $0x328] sm:$0xff]  ;;  %v947_v58 = vld [vmem:[%s2758_s5 + $0xb0] sm:$0xff] }
  0x85   :  { %817 = vmatprep.subr.mxu0 %v342_v12  ;;  %841 = vmatprep.mubr.f32.mxu0 %v1919_v53  ;;  %v940_v53 = vld [vmem:[%s2758_s5 + $0x78] sm:$0xff]  ;;  %v275_v59 = vld [vmem:[%s2756_s3 + $0x320] sm:$0xff]  ;;  %v931_v60 = vld [vmem:[%s2758_s5 + $0x30] sm:$0xff] }
  0x86   :  { %818 = vmatpush2.msra.mxu0 %v341_v13  ;;  %879 = vmatpush1.msra.mxu1 %v371_v14  ;;  %v946_v61 = vld [vmem:[%s2758_s5 + $0xa8] sm:$0xff]  ;;  %v945_v63 = vld [vmem:[%s2758_s5 + $0xa0] sm:$0xff]  ;;  %v944_v1 = vld [vmem:[%s2758_s5 + $0x98] sm:$0xff] }
  0x87   :  { %819 = vmatprep.subr.mxu0 %v336_v15  ;;  %912 = vmatprep.mubr.f32.mxu1 %v1470_v5  ;;  %v930_v62 = vld [vmem:[%s2758_s5 + $0x28] sm:$0xff]  ;;  %v929_v0 = vld [vmem:[%s2758_s5 + $0x20] sm:$0xff]  ;;  %v928_v2 = vld [vmem:[%s2758_s5 + $0x18] sm:$0xff] }
  0x88   :  { %820 = vmatpush2.msra.mxu0 %v335_v16  ;;  %1341 = vmatmul.mubr.msk.f32.vlgmr.msra.gmra.mxu1 %vm490_vm0, %v1801_v11  ;;  %v954_v11 = vld [vmem:[%s2758_s5 + $0xe8] sm:$0xff]  ;;  %v927_v3 = vld [vmem:[%s2758_s5 + $0x10] sm:$0xff]  ;;  %v941_v7 = vld [vmem:[%s2758_s5 + $0x80] sm:$0xff] }
  0x89   :  { %821 = vmatprep.subr.mxu0 %v330_v17  ;;  %1346 = vmatprep.subr.mxu1 %v956_v18  ;;  %v942_v4 = vld [vmem:[%s2758_s5 + $0x88] sm:$0xff]  ;;  %v925_v8 = vld [vmem:[%s2758_s5] sm:$0xff]  ;;  %v988_v9 = vld [vmem:[%s2758_s5 + $0x1f8] sm:$0xff] }
  0x8a   :  { %822 = vmatpush2.msra.mxu0 %v329_v19  ;;  %1347 = vmatpush3.msra.mxu1 %v940_v53  ;;  %v926_v6 = vld [vmem:[%s2758_s5 + $0x8] sm:$0xff]  ;;  %v1004_v10 = vld [vmem:[%s2758_s5 + $0x278] sm:$0xff]  ;;  %v1003_v12 = vld [vmem:[%s2758_s5 + $0x270] sm:$0xff] }
  0x8b   :  { %823 = vmatprep.subr.mxu0 %v324_v20  ;;  %1348 = vmatprep.subr.mxu1 %v955_v21  ;;  %v1002_v13 = vld [vmem:[%s2758_s5 + $0x268] sm:$0xff]  ;;  %v1001_v14 = vld [vmem:[%s2758_s5 + $0x260] sm:$0xff]  ;;  %v1000_v15 = vld [vmem:[%s2758_s5 + $0x258] sm:$0xff] }
  0x8c   :  { %824 = vmatpush2.msra.mxu0 %v323_v22  ;;  %1349 = vmatpush3.msra.mxu1 %v939_v23  ;;  %v999_v16 = vld [vmem:[%s2758_s5 + $0x250] sm:$0xff]  ;;  %v998_v17 = vld [vmem:[%s2758_s5 + $0x248] sm:$0xff]  ;;  %v997_v18 = vld [vmem:[%s2758_s5 + $0x240] sm:$0xff] }
  0x8d   :  { %825 = vmatprep.subr.mxu0 %v318_v24  ;;  %1350 = vmatprep.subr.mxu1 %v954_v11  ;;  %v996_v19 = vld [vmem:[%s2758_s5 + $0x238] sm:$0xff]  ;;  %v995_v53 = vld [vmem:[%s2758_s5 + $0x230] sm:$0xff]  ;;  %v994_v20 = vld [vmem:[%s2758_s5 + $0x228] sm:$0xff] }
  0x8e   :  { %826 = vmatpush2.msra.mxu0 %v317_v25  ;;  %1351 = vmatpush3.msra.mxu1 %v938_v26  ;;  %v993_v21 = vld [vmem:[%s2758_s5 + $0x220] sm:$0xff]  ;;  %v992_v22 = vld [vmem:[%s2758_s5 + $0x218] sm:$0xff]  ;;  %v991_v23 = vld [vmem:[%s2758_s5 + $0x210] sm:$0xff] }
  0x8f   :  { %827 = vmatprep.subr.mxu0 %v312_v27  ;;  %1352 = vmatprep.subr.mxu1 %v953_v28  ;;  %v990_v24 = vld [vmem:[%s2758_s5 + $0x208] sm:$0xff]  ;;  %v989_v11 = vld [vmem:[%s2758_s5 + $0x200] sm:$0xff]  ;;  %v1012_v25 = vld [vmem:[%s2758_s5 + $0x2b8] sm:$0xff] }
  0x90   :  { %828 = vmatpush2.msra.mxu0 %v311_v29  ;;  %1353 = vmatpush3.msra.mxu1 %v937_v30  ;;  %v1011_v26 = vld [vmem:[%s2758_s5 + $0x2b0] sm:$0xff]  ;;  %v1010_v27 = vld [vmem:[%s2758_s5 + $0x2a8] sm:$0xff]  ;;  %v1009_v28 = vld [vmem:[%s2758_s5 + $0x2a0] sm:$0xff] }
  0x91   :  { %829 = vmatprep.subr.mxu0 %v306_v31  ;;  %1354 = vmatprep.subr.mxu1 %v952_v32  ;;  %v1008_v29 = vld [vmem:[%s2758_s5 + $0x298] sm:$0xff]  ;;  %v1007_v30 = vld [vmem:[%s2758_s5 + $0x290] sm:$0xff]  ;;  %v1006_v31 = vld [vmem:[%s2758_s5 + $0x288] sm:$0xff] }
  0x92   :  { %830 = vmatpush2.msra.mxu0 %v305_v34  ;;  %1355 = vmatpush3.msra.mxu1 %v936_v35  ;;  %v1005_v32 = vld [vmem:[%s2758_s5 + $0x280] sm:$0xff] }
  0x93   :  { %831 = vmatprep.subr.mxu0 %v300_v36  ;;  %1356 = vmatprep.subr.mxu1 %v951_v37  ;;  %v2602_v34 = vld [vmem:[%s2757_s4] sm:$0x3f]  ;;  %s1473_s4 = smov [#allocation2]  }
  0x94   :  { %832 = vmatpush2.msra.mxu0 %v299_v38  ;;  %1357 = vmatpush3.msra.mxu1 %v935_v39  ;;  %v444_v35 = vrot.slane %v2602_v34, %v1639_v43  ;;  %v448_v37 = vrot.slane %v2602_v34, %v1642_v44  ;;  %v987_v43 = vld [vmem:[%s2758_s5 + $0x1f0] sm:$0xff]  ;;  %s1331_s10 = sshll.u32 %s1473_s4, 4  ;;  %s1332_s10 = int_to_ptr.vmem [resolvable:$true] %s1331_s10 }
  0x95   :  { %833 = vmatprep.subr.mxu0 %v294_v40  ;;  %1358 = vmatprep.subr.mxu1 %v950_v42  ;;  %v971_v44 = vld [vmem:[%s2758_s5 + $0x170] sm:$0xff]  ;;  %p1453_p1 = scmp.lt.s32.totalorder %s1332_s10, %s1332_s10 }
  0x96   :  { %834 = vmatpush2.msra.mxu0 %v293_v46  ;;  %1359 = vmatpush3.msra.mxu1 %v934_v47 }
  0x97   :  { %835 = vmatprep.subr.mxu0 %v288_v51  ;;  %1360 = vmatprep.subr.mxu1 %v949_v48 }
  0x98   :  { %836 = vmatpush2.msra.mxu0 %v287_v49  ;;  %1361 = vmatpush3.msra.mxu1 %v933_v50  ;;  %v972_v50 = vld [vmem:[%s2758_s5 + $0x178] sm:$0xff] }
  0x99   :  { %837 = vmatprep.subr.mxu0 %v282_v52  ;;  %1362 = vmatprep.subr.mxu1 %v948_v54  ;;  %v986_v52 = vld [vmem:[%s2758_s5 + $0x1e8] sm:$0xff] }
  0x9a   :  { %838 = vmatpush2.msra.mxu0 %v281_v55  ;;  %1363 = vmatpush3.msra.mxu1 %v932_v56  ;;  %v970_v54 = vld [vmem:[%s2758_s5 + $0x168] sm:$0xff]  ;;  %v985_v55 = vld [vmem:[%s2758_s5 + $0x1e0] sm:$0xff] }
  0x9b   :  { %839 = vmatprep.subr.mxu0 %v276_v57  ;;  %1364 = vmatprep.subr.mxu1 %v947_v58  ;;  %v969_v56 = vld [vmem:[%s2758_s5 + $0x160] sm:$0xff]  ;;  %v984_v57 = vld [vmem:[%s2758_s5 + $0x1d8] sm:$0xff] }
  0x9c   :  { %840 = vmatpush2.msra.mxu0 %v275_v59  ;;  %1365 = vmatpush3.msra.mxu1 %v931_v60  ;;  %v968_v58 = vld [vmem:[%s2758_s5 + $0x158] sm:$0xff]  ;;  %v983_v59 = vld [vmem:[%s2758_s5 + $0x1d0] sm:$0xff] }
  0x9d   :  { %842 = vmatmul.mubr.f32.vlgmr.msra.gmra.mxu0 %v1891_v41  ;;  %1366 = vmatprep.subr.mxu1 %v946_v61  ;;  %v943_v41 = vld [vmem:[%s2758_s5 + $0x90] sm:$0xff]  ;;  %v982_v61 = vld [vmem:[%s2758_s5 + $0x1c8] sm:$0xff] }
  0x9e   :  { %1367 = vmatpush3.msra.mxu1 %v930_v62  ;;  %1164 = vmatprep.subr.mxu0 %v1470_v5  ;;  %v967_v60 = vld [vmem:[%s2758_s5 + $0x150] sm:$0xff]  ;;  %v966_v62 = vld [vmem:[%s2758_s5 + $0x148] sm:$0xff] }
  0x9f   :  { %1368 = vmatprep.subr.mxu1 %v945_v63  ;;  %1165 = vmatpush1.msra.mxu0 %v1004_v10  ;;  %v981_v63 = vld [vmem:[%s2758_s5 + $0x1c0] sm:$0xff]  ;;  %v960_v10 = vld [vmem:[%s2758_s5 + $0x118] sm:$0xff] }
  0xa0   :  { %1369 = vmatpush3.msra.mxu1 %v929_v0  ;;  %1166 = vmatprep.subr.mxu0 %v1470_v5  ;;  %v965_v0 = vld [vmem:[%s2758_s5 + $0x140] sm:$0xff] }
  0xa1   :  { %1370 = vmatprep.subr.mxu1 %v944_v1  ;;  %1167 = vmatpush1.msra.mxu0 %v1003_v12  ;;  %v980_v1 = vld [vmem:[%s2758_s5 + $0x1b8] sm:$0xff]  ;;  %v975_v12 = vld [vmem:[%s2758_s5 + $0x190] sm:$0xff] }
  0xa2   :  { %1371 = vmatpush3.msra.mxu1 %v928_v2  ;;  %1168 = vmatprep.subr.mxu0 %v1470_v5  ;;  %v964_v2 = vld [vmem:[%s2758_s5 + $0x138] sm:$0xff] }
  0xa3   :  { %1372 = vmatprep.subr.mxu1 %v943_v41  ;;  %1169 = vmatpush1.msra.mxu0 %v1002_v13  ;;  %v979_v41 = vld [vmem:[%s2758_s5 + $0x1b0] sm:$0xff] }
  0xa4   :  { %1373 = vmatpush3.msra.mxu1 %v927_v3  ;;  %1170 = vmatprep.subr.mxu0 %v1470_v5  ;;  %v963_v3 = vld [vmem:[%s2758_s5 + $0x130] sm:$0xff] }
  0xa5   :  { %1374 = vmatprep.subr.mxu1 %v942_v4  ;;  %1171 = vmatpush1.msra.mxu0 %v1001_v14  ;;  %v978_v4 = vld [vmem:[%s2758_s5 + $0x1a8] sm:$0xff]  ;;  %v959_v13 = vld [vmem:[%s2758_s5 + $0x110] sm:$0xff] }
  0xa6   :  { %1375 = vmatpush3.msra.mxu1 %v926_v6  ;;  %1172 = vmatprep.subr.mxu0 %v1470_v5  ;;  %v962_v6 = vld [vmem:[%s2758_s5 + $0x128] sm:$0xff] }
  0xa7   :  { %1376 = vmatprep.subr.mxu1 %v941_v7  ;;  %1173 = vmatpush1.msra.mxu0 %v1000_v15  ;;  %v977_v7 = vld [vmem:[%s2758_s5 + $0x1a0] sm:$0xff]  ;;  %v974_v14 = vld [vmem:[%s2758_s5 + $0x188] sm:$0xff] }
  0xa8   :  { %1377 = vmatpush3.msra.mxu1 %v925_v8  ;;  %1174 = vmatprep.subr.mxu0 %v1470_v5  ;;  %v961_v8 = vld [vmem:[%s2758_s5 + $0x120] sm:$0xff]  ;;  %v958_v15 = vld [vmem:[%s2758_s5 + $0x108] sm:$0xff] }
  0xa9   :  { %1381 = vmatprep.subr.mxu1 %v988_v9  ;;  %1175 = vmatpush1.msra.mxu0 %v999_v16  ;;  %v976_v9 = vld [vmem:[%s2758_s5 + $0x198] sm:$0xff]  ;;  %v973_v16 = vld [vmem:[%s2758_s5 + $0x180] sm:$0xff] }
  0xaa   :  { %1176 = vmatprep.subr.mxu0 %v1470_v5 }
  0xab   :  { %1177 = vmatpush1.msra.mxu0 %v998_v17  ;;  %v957_v17 = vld [vmem:[%s2758_s5 + $0x100] sm:$0xff] }
  0xac   :  { %1178 = vmatprep.subr.mxu0 %v1470_v5 }
  0xad   :  { %1179 = vmatpush1.msra.mxu0 %v997_v18  ;;  %v455_v18 = vsub.s32 3, %v1612_v33 }
  0xae   :  { %1180 = vmatprep.subr.mxu0 %v1470_v5 }
  0xaf   :  { %1181 = vmatpush1.msra.mxu0 %v996_v19  ;;  %v452_v19 = vrot.slane %v2602_v34, %v1645_v45  ;;  %v463_v45 = vsub.s32 5, %v1612_v33 }
  0xb0   :  { %1182 = vmatprep.subr.mxu0 %v1470_v5 }
  0xb1   :  { %1183 = vmatpush1.msra.mxu0 %v995_v53  ;;  %v456_v53 = vrot.slane %v2602_v34, %v455_v18 }
  0xb2   :  { %1184 = vmatprep.subr.mxu0 %v1470_v5 }
  0xb3   :  { %1185 = vmatpush1.msra.mxu0 %v994_v20 }
  0xb4   :  { %1186 = vmatprep.subr.mxu0 %v1470_v5 }
  0xb5   :  { %1187 = vmatpush1.msra.mxu0 %v993_v21 }
  0xb6   :  { %1188 = vmatprep.subr.mxu0 %v1470_v5 }
  0xb7   :  { %1189 = vmatpush1.msra.mxu0 %v992_v22 }
  0xb8   :  { %1190 = vmatprep.subr.mxu0 %v1470_v5 }
  0xb9   :  { %1191 = vmatpush1.msra.mxu0 %v991_v23 }
  0xba   :  { %1192 = vmatprep.subr.mxu0 %v1470_v5 }
  0xbb   :  { %1193 = vmatpush1.msra.mxu0 %v990_v24 }
  0xbc   :  { %1194 = vmatprep.subr.mxu0 %v1470_v5 }
  0xbd   :  { %1195 = vmatpush1.msra.mxu0 %v989_v11 }
  0xbe   :  { %1212 = vmatprep.subr.mxu0 %v1470_v5 }
  0xbf   :  { %1213 = vmatpush2.msra.mxu0 %v1012_v25 }
  0xc0   :  { %1214 = vmatprep.subr.mxu0 %v1470_v5 }
  0xc1   :  { %1215 = vmatpush2.msra.mxu0 %v1011_v26 }
  0xc2   :  { %1216 = vmatprep.subr.mxu0 %v1470_v5 }
  0xc3   :  { %1217 = vmatpush2.msra.mxu0 %v1010_v27 }
  0xc4   :  { %1218 = vmatprep.subr.mxu0 %v1470_v5 }
  0xc5   :  { %1219 = vmatpush2.msra.mxu0 %v1009_v28 }
  0xc6   :  { %1220 = vmatprep.subr.mxu0 %v1470_v5 }
  0xc7   :  { %1221 = vmatpush2.msra.mxu0 %v1008_v29  ;;  %v459_v29 = vsub.s32 4, %v1612_v33  ;;  %v1242_v33 = vld [vmem:[%s2760_s7 + $0x38] sm:$0xff] }
  0xc8   :  { %1222 = vmatprep.subr.mxu0 %v1470_v5 }
  0xc9   :  { %1223 = vmatpush2.msra.mxu0 %v1007_v30  ;;  %v460_v30 = vrot.slane %v2602_v34, %v459_v29 }
  0xca   :  { %1224 = vmatprep.subr.mxu0 %v1470_v5 }
  0xcb   :  { %1225 = vmatpush2.msra.mxu0 %v1006_v31  ;;  %v464_v31 = vrot.slane %v2602_v34, %v463_v45  ;;  %v1241_v34 = vld [vmem:[%s2760_s7 + $0x30] sm:$0xff] }
  0xcc   :  { %1226 = vmatprep.subr.mxu0 %v1470_v5 }
  0xcd   :  { %1227 = vmatpush2.msra.mxu0 %v1005_v32 }
  0xea   :  { %v630_v36 = vpop.f32.mrf.mxu1 }
  0xec   :  { %v632_v42 = vpop.f32.mrf.mxu1 }
 0x102   :  { %v559_v38 = vpop.f32.mrf.mxu0 }
 0x103   :  { %v560_v39 = vadd.f32 %v559_v38, %v444_v35 }
 0x104   :  { %v561_v40 = vpop.f32.mrf.mxu0 }
 0x105   :  { %v562_v46 = vadd.f32 %v561_v40, %v448_v37  ;;  %v631_v47 = vadd.f32 %v630_v36, %v560_v39 }
 0x107   :  { %v633_v51 = vadd.f32 %v632_v42, %v562_v46  ;;  %v919_v49 = vmax.f32 %v631_v47, 0.0 }
 0x109   :  { %v920_v48 = vmax.f32 %v633_v51, 0.0  ;;  %v1240_v51 = vld [vmem:[%s2760_s7 + $0x28] sm:$0xff] }
 0x10b   :  { %1088 = vmatprep.mubr.f32.mxu1 %v920_v48  ;;  %v1239_v48 = vld [vmem:[%s2760_s7 + $0x20] sm:$0xff] }
 0x10c   :  { %1089 = vmatmul.mubr.f32.vlgmr.msra.gmra.mxu1 %v919_v49  ;;  %v1238_v49 = vld [vmem:[%s2760_s7 + $0x18] sm:$0xff] }
 0x10d   :  { %1382 = vmatpush3.msra.mxu1 %v972_v50  ;;  %v1237_v50 = vld [vmem:[%s2760_s7 + $0x10] sm:$0xff] }
 0x10e   :  { %1383 = vmatprep.subr.mxu1 %v987_v43  ;;  %v1236_v43 = vld [vmem:[%s2760_s7 + $0x8] sm:$0xff] }
 0x10f   :  { %1384 = vmatpush3.msra.mxu1 %v971_v44  ;;  %v1235_v44 = vld [vmem:[%s2760_s7] sm:$0xff] }
 0x110   :  { %1385 = vmatprep.subr.mxu1 %v986_v52 }
 0x111   :  { %1386 = vmatpush3.msra.mxu1 %v970_v54 }
 0x112   :  { %1387 = vmatprep.subr.mxu1 %v985_v55 }
 0x113   :  { %1388 = vmatpush3.msra.mxu1 %v969_v56 }
 0x114   :  { %1389 = vmatprep.subr.mxu1 %v984_v57 }
 0x115   :  { %1390 = vmatpush3.msra.mxu1 %v968_v58  ;;  %v1342_v58 = vld [vmem:[%s2759_s6] ss:$0 sm:$0xff]  ;;  %s1448_s6 = scalar_lea.vmem %s1332_s10, 32 }
 0x116   :  { %1391 = vmatprep.subr.mxu1 %v983_v59  ;;  %p1449_p0 = scmp.ne.s32.totalorder %s1332_s10, %s1448_s6  ;;  %p1454_p2 = scmp.lt.s32.totalorder %s1448_s6, %s1448_s6 }
 0x117   :  { %1392 = vmatpush3.msra.mxu1 %v967_v60 }
 0x118   :  { %1393 = vmatprep.subr.mxu1 %v982_v61  ;;  %p1455_p3 = por %p1454_p2, %p1453_p1 }
 0x119   :  { %1394 = vmatpush3.msra.mxu1 %v966_v62 }
 0x11a   :  { %1395 = vmatprep.subr.mxu1 %v981_v63  ;;  %p1456_p4 = pnand %p1455_p3, %p1449_p0 }
 0x11b   :  { %1396 = vmatpush3.msra.mxu1 %v965_v0  ;;  %v772_v20 = vpop.f32.mrf.mxu0 }
 0x11c   :  { %1397 = vmatprep.subr.mxu1 %v980_v1 }
 0x11d   :  { %1398 = vmatpush3.msra.mxu1 %v964_v2  ;;  %v774_v11 = vpop.f32.mrf.mxu0 }
 0x11e   :  { %1399 = vmatprep.subr.mxu1 %v979_v41 }
 0x11f   :  { %1400 = vmatpush3.msra.mxu1 %v963_v3 }
 0x120   :  { %1401 = vmatprep.subr.mxu1 %v978_v4 }
 0x121   :  { %1402 = vmatpush3.msra.mxu1 %v962_v6 }
 0x122   :  { %1403 = vmatprep.subr.mxu1 %v977_v7 }
 0x123   :  { %1404 = vmatpush3.msra.mxu1 %v961_v8 }
 0x124   :  { %1405 = vmatprep.subr.mxu1 %v976_v9 }
 0x125   :  { %1406 = vmatpush3.msra.mxu1 %v960_v10 }
 0x126   :  { %1407 = vmatprep.subr.mxu1 %v975_v12 }
 0x127   :  { %1408 = vmatpush3.msra.mxu1 %v959_v13 }
 0x128   :  { %1409 = vmatprep.subr.mxu1 %v974_v14 }
 0x129   :  { %1410 = vmatpush3.msra.mxu1 %v958_v15 }
 0x12a   :  { %1411 = vmatprep.subr.mxu1 %v973_v16 }
 0x12b   :  { %1412 = vmatpush3.msra.mxu1 %v957_v17 }
 0x12c   :  { %1425 = vmatprep.subr.mxu1 %v1470_v5 }
 0x12d   :  { %v701_v21 = vpop.f32.mrf.mxu1 }
 0x12e   :  { %v702_v22 = vadd.f32 %v701_v21, %v452_v19 }
 0x12f   :  { %v703_v23 = vpop.f32.mrf.mxu1 }
 0x130   :  { %v704_v24 = vadd.f32 %v703_v23, %v456_v53  ;;  %v773_v25 = vadd.f32 %v772_v20, %v702_v22 }
 0x132   :  { %v775_v26 = vadd.f32 %v774_v11, %v704_v24  ;;  %v921_v28 = vmax.f32 %v773_v25, 0.0 }
 0x134   :  { %v922_v27 = vmax.f32 %v775_v26, 0.0 }
 0x136   :  { %1158 = vmatprep.mubr.f32.mxu1 %v922_v27 }
 0x137   :  { %1159 = vmatmul.mubr.f32.vlgmr.msra.gmra.mxu1 %v921_v28 }
 0x138   :  { %1426 = vmatpush3.msra.mxu1 %v1242_v33  ;;  %1441 = vmatprep.mubr.msk.f32.mxu1 %vm1472_vm2, %v1470_v5 }
 0x139   :  { %1427 = vmatprep.subr.mxu1 %v1470_v5 }
 0x13a   :  { %1428 = vmatpush3.msra.mxu1 %v1241_v34 }
 0x13b   :  { %1429 = vmatprep.subr.mxu1 %v1470_v5 }
 0x13c   :  { %1430 = vmatpush3.msra.mxu1 %v1240_v51 }
 0x13d   :  { %1431 = vmatprep.subr.mxu1 %v1470_v5 }
 0x13e   :  { %1432 = vmatpush3.msra.mxu1 %v1239_v48 }
 0x13f   :  { %1433 = vmatprep.subr.mxu1 %v1470_v5 }
 0x140   :  { %1434 = vmatpush3.msra.mxu1 %v1238_v49 }
 0x141   :  { %1435 = vmatprep.subr.mxu1 %v1470_v5 }
 0x142   :  { %1436 = vmatpush3.msra.mxu1 %v1237_v50 }
 0x143   :  { %1437 = vmatprep.subr.mxu1 %v1470_v5 }
 0x144   :  { %1438 = vmatpush3.msra.mxu1 %v1236_v43 }
 0x145   :  { %1439 = vmatprep.subr.mxu1 %v1470_v5  ;;  %v1344_v5 = vld [vmem:[%s2761_s8] ss:$0 sm:$0xff] }
 0x146   :  { %1440 = vmatpush3.msra.mxu1 %v1235_v44 }
 0x148   :  { %v914_v35 = vpop.f32.mrf.mxu1 }
 0x14a   :  { %v916_v40 = vpop.f32.mrf.mxu1 }
 0x15d   :  { %v843_v32 = vpop.f32.mrf.mxu0 }
 0x15e   :  { %v844_v36 = vadd.f32 %v843_v32, %v460_v30 }
 0x15f   :  { %v845_v37 = vpop.f32.mrf.mxu0 }
 0x160   :  { %v846_v38 = vadd.f32 %v845_v37, %v464_v31  ;;  %v915_v39 = vadd.f32 %v914_v35, %v844_v36 }
 0x162   :  { %v917_v42 = vadd.f32 %v916_v40, %v846_v38  ;;  %v923_v47 = vmax.f32 %v915_v39, 0.0 }
 0x164   :  { %v924_v46 = vmax.f32 %v917_v42, 0.0 }
 0x166   :  { %1343 = vmatprep.mubr.msk.f32.mxu0 %vm1020_vm1, %v924_v46 }
 0x167   :  { %1229 = vmatmul.mubr.f32.vlgmr.msra.gmra.mxu0 %v923_v47 }
 0x1cc   :  { %v1378_v52 = vpop.f32.mrf.mxu1 }
 0x1ce   :  { %v1379_v54 = vpop.f32.mrf.mxu1 }
 0x1cf   :  { %v1380_v57 = vadd.f32 %v1379_v54, %v1378_v52 }
 0x1d1   :  { %v1091_v60 = vadd.f32 %v1380_v57, %v1342_v58 }
 0x1f7   :  { %v1413_v55 = vpop.f32.mrf.mxu1 }
 0x1f9   :  { %v1414_v56 = vpop.f32.mrf.mxu1 }
 0x1fa   :  { %v1415_v59 = vadd.f32 %v1414_v56, %v1413_v55 }
 0x1fc   :  { %v1161_v61 = vadd.f32 %v1415_v59, %v1091_v60 }
 0x227   :  { %v1230_v62 = vpop.f32.mrf.mxu0 }
 0x228   :  { %v1231_v63 = vadd.f32 %v1230_v62, %v1161_v61 }
 0x229   :  { %v1232_v0 = vpop.f32.mrf.mxu0 }
 0x22a   :  { %v1234_v1 = vmax.f32 %v1231_v63, 0.0 }
 0x22c   :  { %1442 = vmatmul.mubr.msk.f32.vlgmr.msra.gmra.mxu1 %vm1020_vm1, %v1234_v1 }
 0x2ec   :  { %v1319_v2 = vpop.f32.mrf.mxu1 }
 0x2ed   :  { %v1320_v41 = vadd.f32 %v1344_v5, %v1319_v2 }
 0x2ee   :  { %v1443_v3 = vpop.f32.mrf.mxu1 }
 0x2ef   :  { %1324 = vst.msk [vmem:[#allocation2] sm:$0x3] %vm1323_vm3, %v1320_v41 }
 0x2f0   :  { %1459 = shalt.err (!%p1456_p4)
}
 0x2f1   :  { %1334 = dma.vmem_to_hbm [thread:$0]  %s1332_s10, 32, %s2762_s9, [#allocation3]  }
 0x2f2   :  { %1468 = dma.done.wait [#allocation3], 32  }
 0x2f3   :  { %1469 = vsyncadd [#allocation3], 4294967264 }
 0x2f4   :  { %1338 = vsyncpa [#allocation3], 1 }

</bundles_post_ra>
